<compile_context>
chip_gen: v6e
topology: v6e:2x2x1
jax: 0.10.0
libtpu: 0.0.40
codegen_flags: <defaults>
</compile_context>

<pallas_src>
import jax
import jax.numpy as jnp
from jax.experimental import pallas as pl
from jax.experimental.pallas import tpu as pltpu

_EPS = 1e-5      # BatchNorm eps (PyTorch default)
_CP = 8          # channel padding: every layer runs with 8 channels on sublanes


# ---------------------------------------------------------------------------
# In-kernel math helpers
# ---------------------------------------------------------------------------
def _gelu_tanh(x):
    # tanh-form GELU: routes the transcendental to the EUP slot; deviation vs the
    # exact erf form (nn.GELU() default) is ~1e-3, well inside the test tolerance.
    c = 0.7978845608028654  # sqrt(2/pi)
    return 0.5 * x * (1.0 + jnp.tanh(c * (x + 0.044715 * (x * x * x))))


# ---------------------------------------------------------------------------
# Fully fused kernel: cv1 -> cv2.conv -> DWR(3x3, d1, d3, d5, 1x1 + res) -> BN -> GELU
# ---------------------------------------------------------------------------
def _make_kernel(wg, mg, gm):
    cp = _CP
    mslab = mg + 2 * gm
    taps = [(kh, kw) for kh in range(3) for kw in range(3)]
    B11, BNS, BNB = 6, 7, 8        # columns of the packed constants block

    def kernel(x_ref, m_ref, w3_ref, w11_ref, c_ref, o_ref,
               slab_a, slab_b, tap_s, cat_s):
        consts = c_ref[...]                                # (cp, 128), loaded once
        col = lambda j: consts[:, j:j + 1]                 # per-channel (cp, 1)
        maskb = jnp.broadcast_to(m_ref[...], (cp, mg))     # hoisted single broadcast

        # Zero ONLY the guard bands that the shifted tap reads can touch; the
        # interior [gm:gm+mg] of both slabs is fully rewritten every grid step.
        zg = jnp.zeros((cp, gm), jnp.float32)
        slab_a[:, 0:gm] = zg
        slab_a[:, gm + mg:mslab] = zg
        slab_b[:, 0:gm] = zg
        slab_b[:, gm + mg:mslab] = zg

        def conv3(load, layer, dil, pad):
            # 3x3 conv (dilation dil, zero-pad pad) + folded BN + ReLU as ONE
            # (cp,72)@(72,mg) MXU dot: stack the 9 shifted views, then contract.
            for t, (kh, kw) in enumerate(taps):
                sh = (kh * dil - pad) * wg + (kw * dil - pad)
                tap_s[t * cp:(t + 1) * cp, :] = load(gm + sh)
            acc = jnp.dot(w3_ref[layer], tap_s[...],
                          preferred_element_type=jnp.float32)
            return jnp.maximum(acc + col(layer), 0.0)

        x_load = lambda s: x_ref[0, :, s:s + mg]
        a_load = lambda s: slab_a[:, s:s + mg]
        b_load = lambda s: slab_b[:, s:s + mg]

        # cv1 = Conv(c1, c_, 3)      (padding=0, valid conv).  Its halo is left
        # unmasked by design: cv2.conv's valid outputs only read the valid 14x14
        # region (shifts 0..+2 rows/cols), and all non-valid outputs are masked.
        slab_a[:, gm:gm + mg] = conv3(x_load, 0, 1, 0)
        # cv2.conv = Conv(c_, c2, 3) (padding=0); mask realizes the exact zero-pad ring
        y = conv3(a_load, 1, 1, 0) * maskb
        slab_b[:, gm:gm + mg] = y
        # DWR.conv_3x3 (padding=1); cv1's slab is dead now -> reuse it
        slab_a[:, gm:gm + mg] = conv3(b_load, 2, 1, 1) * maskb
        # Dilated branches (pad == dilation -> same size; torch interpolate is a no-op)
        cat_s[0 * cp:1 * cp, :] = conv3(a_load, 3, 1, 1)
        cat_s[1 * cp:2 * cp, :] = conv3(a_load, 4, 3, 3)
        cat_s[2 * cp:3 * cp, :] = conv3(a_load, 5, 5, 5)
        # DWR.conv_1x1 (+BN+ReLU) on cat([x1,x2,x3]), "+ x" residual, cv2.bn, GELU
        z = jnp.dot(w11_ref[...], cat_s[...], preferred_element_type=jnp.float32)
        z = jnp.maximum(z + col(B11), 0.0) + y
        z = z * col(BNS) + col(BNB)
        o_ref[0, :, :] = _gelu_tanh(z)

    return kernel


# ---------------------------------------------------------------------------
# Host-side packing (BN already folded into weights at parameter creation)
# ---------------------------------------------------------------------------
def _pack_conv3(p, cp=_CP):
    # p['w']: (3,3,cin,cout) -> lane-dense (cp, 9*cp): w[o, t*cp+ci] = W[kh,kw,ci,o]
    _, _, cin, cout = p['w'].shape
    w = jnp.transpose(p['w'], (3, 0, 1, 2)).reshape(cout, 9, cin)
    w = jnp.pad(w, ((0, cp - cout), (0, 0), (0, cp - cin))).reshape(cp, 9 * cp)
    b = jnp.pad(p['b'], (0, cp - cout))
    return w, b


def _pack_conv1(p, cp=_CP):
    # p['w']: (1,1,3c,cout) -> lane-dense (cp, 3*cp): w[o, branch*cp+ci]
    w = p['w'][0, 0]                                   # (3c, cout)
    cin3, cout = w.shape
    c = cin3 // 3
    w = jnp.transpose(w, (1, 0)).reshape(cout, 3, c)
    w = jnp.pad(w, ((0, cp - cout), (0, 0), (0, cp - c))).reshape(cp, 3 * cp)
    b = jnp.pad(p['b'], (0, cp - cout))
    return w, b


# ---------------------------------------------------------------------------
# Forward wrapper
# ---------------------------------------------------------------------------
def bottleneck_dwrseg_forward(x_nchw, params):
    # c1 != c2 in the demo -> Bottleneck_DWRSeg.add == False: out = cv2(cv1(x)).
    n, c1, h, w = x_nchw.shape
    c2 = params['cv2_bn']['scale'].shape[0]
    c_ = params['cv1']['b'].shape[0]
    cp = _CP
    assert c1 <= cp and c_ <= cp and c2 <= cp, "kernel assumes every layer has <= 8 channels"

    h2, w2 = h - 4, w - 4             # after the two padding=0 3x3 convs
    padmax = 5                        # largest zero-pad needed (dilation-5 branch)
    off = padmax                      # valid region sits at this grid offset
    hg = off + max(h, h2 + padmax)
    wg = off + max(w, w2 + padmax)
    m_valid = hg * wg                                     # 484 at the demo size
    MG = ((m_valid + 127) // 128) * 128                   # lane-dense spatial axis (512)
    gm = ((padmax * wg + padmax + 127) // 128) * 128      # guard >= max |tap shift|
    mslab = MG + 2 * gm

    # Channel-major input slab (N, cp, mslab): image at grid offset (off, off),
    # zeros elsewhere (guards + lane padding included).  No transpose from NCHW.
    grid = jnp.zeros((n, cp, hg, wg), jnp.float32)
    grid = grid.at[:, :c1, off:off + h, off:off + w].set(x_nchw.astype(jnp.float32))
    xg = jnp.pad(grid.reshape(n, cp, m_valid),
                 ((0, 0), (0, 0), (gm, mslab - gm - m_valid)))

    # Mask of the valid (h2, w2) region (zero in the lane padding 484..511 too):
    # realizes the exact zero-padding rings of the padded DWR convs.
    mask = jnp.zeros((hg, wg), jnp.float32).at[off:off + h2, off:off + w2].set(1.0)
    mask = jnp.pad(mask.reshape(1, m_valid), ((0, 0), (0, MG - m_valid)))

    names = ('cv1', 'cv2_conv', 'dwr_3x3', 'dwr_d1', 'dwr_d3', 'dwr_d5')
    packed = [_pack_conv3(params[k], cp) for k in names]
    w3 = jnp.stack([p[0] for p in packed])                # (6, cp, 72) lane-dense
    w11, b11 = _pack_conv1(params['dwr_1x1'], cp)         # (cp, 24), (cp,)
    bns = jnp.pad(params['cv2_bn']['scale'], (0, cp - c2))
    bnb = jnp.pad(params['cv2_bn']['bias'], (0, cp - c2))
    cols = [p[1] for p in packed] + [b11, bns, bnb]       # 9 per-channel constant cols
    const = jnp.zeros((cp, 128), jnp.float32).at[:, :len(cols)].set(jnp.stack(cols, 1))

    flops = 2 * n * cp * MG * (6 * 9 * cp + 3 * cp)
    transcendentals = n * cp * MG
    bytes_accessed = 4 * (int(xg.size) + int(mask.size) + int(w3.size)
                          + int(w11.size) + int(const.size) + n * cp * MG)

    out = pl.pallas_call(
        _make_kernel(wg, MG, gm),
        out_shape=jax.ShapeDtypeStruct((n, cp, MG), jnp.float32),
        grid_spec=pltpu.PrefetchScalarGridSpec(
            num_scalar_prefetch=0,
            # TODO(synk): add a spatial "parallel" axis (7-row halo) so both v7x
            # TensorCores stay busy when n == 1.
            grid=(n,),
            in_specs=[
                pl.BlockSpec((1, cp, mslab), lambda i: (i, 0, 0)),
                pl.BlockSpec((1, MG), lambda i: (0, 0)),
                pl.BlockSpec((6, cp, 9 * cp), lambda i: (0, 0, 0)),
                pl.BlockSpec((cp, 3 * cp), lambda i: (0, 0)),
                pl.BlockSpec((cp, 128), lambda i: (0, 0)),
            ],
            out_specs=pl.BlockSpec((1, cp, MG), lambda i: (i, 0, 0)),
            scratch_shapes=[
                pltpu.VMEM((cp, mslab), jnp.float32),    # slab A: cv1 out, reused for DWR 3x3 out
                pltpu.VMEM((cp, mslab), jnp.float32),    # slab B: cv2.conv out (residual source)
                pltpu.VMEM((9 * cp, MG), jnp.float32),   # tap-stacked conv RHS
                pltpu.VMEM((3 * cp, MG), jnp.float32),   # cat([x1,x2,x3]) for the 1x1
            ],
        ),
        compiler_params=pltpu.CompilerParams(
            dimension_semantics=("parallel",)),
        cost_estimate=pl.CostEstimate(
            flops=flops, transcendentals=transcendentals,
            bytes_accessed=bytes_accessed),
    )(xg, mask, w3, w11, const)

    # (N, cp, MG) -> drop lane padding -> NCHW valid region (pure slices).
    out = out[:, :c2, :m_valid].reshape(n, c2, hg, wg)
    return out[:, :, off:off + h2, off:off + w2]


# ---------------------------------------------------------------------------
# Deterministic synthetic parameters (BN scale folded into the conv kernels)
# ---------------------------------------------------------------------------
def make_conv_bn(key, cin, cout, k):
    ks = jax.random.split(key, 6)
    w = jax.random.normal(ks[0], (k, k, cin, cout), jnp.float32) / jnp.sqrt(float(k * k * cin))
    cb = 0.1 * jax.random.normal(ks[1], (cout,), jnp.float32)
    gamma = 1.0 + 0.1 * jax.random.normal(ks[2], (cout,), jnp.float32)
    beta = 0.1 * jax.random.normal(ks[3], (cout,), jnp.float32)
    mean = 0.1 * jax.random.normal(ks[4], (cout,), jnp.float32)
    var = 1.0 + 0.1 * jax.random.uniform(ks[5], (cout,), jnp.float32)
    scale = gamma / jnp.sqrt(var + _EPS)
    bias = beta + (cb - mean) * scale
    return {'w': w * scale, 'b': bias}        # conv+BN folded: y = conv(x, w*s) + bias


def make_bn(key, c):
    ks = jax.random.split(key, 4)
    gamma = 1.0 + 0.1 * jax.random.normal(ks[0], (c,), jnp.float32)
    beta = 0.1 * jax.random.normal(ks[1], (c,), jnp.float32)
    mean = 0.1 * jax.random.normal(ks[2], (c,), jnp.float32)
    var = 1.0 + 0.1 * jax.random.uniform(ks[3], (c,), jnp.float32)
    scale = gamma / jnp.sqrt(var + _EPS)
    return {'scale': scale, 'bias': beta - mean * scale}


# ---------------------------------------------------------------------------
# Pure-JAX (XLA) reference for a numerical sanity check
# ---------------------------------------------------------------------------
def _ref_conv(x, p, pad, dil):
    y = jax.lax.conv_general_dilated(
        x, p['w'], window_strides=(1, 1), padding=((pad, pad), (pad, pad)),
        rhs_dilation=(dil, dil), dimension_numbers=('NHWC', 'HWIO', 'NHWC'),
        precision=jax.lax.Precision.HIGHEST)
    return jnp.maximum(y + p['b'], 0.0)


def _ref_forward(x_nchw, params):
    x = jnp.transpose(x_nchw, (0, 2, 3, 1)).astype(jnp.float32)
    y = _ref_conv(x, params['cv1'], 0, 1)
    y = _ref_conv(y, params['cv2_conv'], 0, 1)
    x_ = _ref_conv(y, params['dwr_3x3'], 1, 1)
    x1 = _ref_conv(x_, params['dwr_d1'], 1, 1)
    x2 = _ref_conv(x_, params['dwr_d3'], 3, 3)
    x3 = _ref_conv(x_, params['dwr_d5'], 5, 5)
    cat = jnp.concatenate([x1, x2, x3], axis=-1)
    z = _ref_conv(cat, params['dwr_1x1'], 0, 1) + y
    z = z * params['cv2_bn']['scale'] + params['cv2_bn']['bias']
    z = jax.nn.gelu(z, approximate=False)
    return jnp.transpose(z, (0, 3, 1, 2))


# ---------------------------------------------------------------------------
if __name__ == "__main__":
    key = jax.random.PRNGKey(0)
    c1, c2, e = 4, 8, 0.5             # c1 != c2 -> Bottleneck add = False
    c_hidden = int(c2 * e)            # 4
    n, h, w = 2, 16, 16

    ks = jax.random.split(key, 9)
    params = {
        'cv1':      make_conv_bn(ks[0], c1, c_hidden, 3),
        'cv2_conv': make_conv_bn(ks[1], c_hidden, c2, 3),
        'dwr_3x3':  make_conv_bn(ks[2], c2, c2, 3),
        'dwr_d1':   make_conv_bn(ks[3], c2, c2, 3),
        'dwr_d3':   make_conv_bn(ks[4], c2, c2, 3),
        'dwr_d5':   make_conv_bn(ks[5], c2, c2, 3),
        'dwr_1x1':  make_conv_bn(ks[6], 3 * c2, c2, 1),
        'cv2_bn':   make_bn(ks[7], c2),
    }
    x = jax.random.normal(ks[8], (n, c1, h, w), jnp.float32)

    fwd = jax.jit(lambda xx: bottleneck_dwrseg_forward(xx, params))
    out = fwd(x)
    jax.block_until_ready(out)
    assert out.shape == (n, c2, h - 4, w - 4), out.shape

    ref = jax.jit(lambda xx: _ref_forward(xx, params))(x)
    jax.block_until_ready(ref)
    max_err = float(jnp.max(jnp.abs(out - ref)))
    # Kernel uses default (bf16-pass) MXU precision and tanh-form GELU vs. the
    # HIGHEST-precision, exact-erf reference; documented tolerance 2e-2.
    assert bool(jnp.allclose(out, ref, rtol=2e-2, atol=2e-2)), max_err

    print("KERNEL_OK")
</pallas_src>

<mosaic_0001>
module attributes {stable_mosaic.version = 11 : i64} {
  func.func @kernel(%arg0: i32, %arg1: memref<1x8x768xf32, #tpu.memory_space<vmem>>, %arg2: memref<1x512xf32, #tpu.memory_space<vmem>>, %arg3: memref<6x8x72xf32, #tpu.memory_space<vmem>>, %arg4: memref<8x24xf32, #tpu.memory_space<vmem>>, %arg5: memref<8x128xf32, #tpu.memory_space<vmem>>, %arg6: memref<1x8x512xf32, #tpu.memory_space<vmem>>, %arg7: memref<8x768xf32, #tpu.memory_space<vmem>>, %arg8: memref<8x768xf32, #tpu.memory_space<vmem>>, %arg9: memref<72x512xf32, #tpu.memory_space<vmem>>, %arg10: memref<24x512xf32, #tpu.memory_space<vmem>>) attributes {dimension_semantics = [#tpu.dimension_semantics<parallel>], iteration_bounds = array<i64: 2>, scalar_prefetch = 0 : i64, scratch_operands = 4 : i64, tpu.core_type = #tpu.core_type<tc>, window_params = [{transform_indices = @transform_0, window_bounds = array<i64: 1, 8, 768>}, {pipeline_mode = #tpu.pipeline_mode<synchronous>, transform_indices = @transform_1, window_bounds = array<i64: 1, 512>}, {pipeline_mode = #tpu.pipeline_mode<synchronous>, transform_indices = @transform_2, window_bounds = array<i64: 6, 8, 72>}, {pipeline_mode = #tpu.pipeline_mode<synchronous>, transform_indices = @transform_3, window_bounds = array<i64: 8, 24>}, {pipeline_mode = #tpu.pipeline_mode<synchronous>, transform_indices = @transform_4, window_bounds = array<i64: 8, 128>}, {transform_indices = @transform_5, window_bounds = array<i64: 1, 8, 512>}]} {
    %c0 = arith.constant 0 : index
    %c0_0 = arith.constant 0 : index
    %0 = vector.load %arg5[%c0, %c0_0] : memref<8x128xf32, #tpu.memory_space<vmem>>, vector<8x128xf32>
    %c0_1 = arith.constant 0 : index
    %c0_2 = arith.constant 0 : index
    %1 = vector.load %arg2[%c0_1, %c0_2] : memref<1x512xf32, #tpu.memory_space<vmem>>, vector<1x512xf32>
    %2 = vector.shape_cast %1 : vector<1x512xf32> to vector<1x512xf32>
    %3 = vector.broadcast %2 : vector<1x512xf32> to vector<8x512xf32>
    %cst = arith.constant 0.000000e+00 : f32
    %4 = vector.broadcast %cst : f32 to vector<8x128xf32>
    %c0_3 = arith.constant 0 : index
    %c0_4 = arith.constant 0 : index
    %5 = vector.load %arg7[%c0_3, %c0_4] : memref<8x768xf32, #tpu.memory_space<vmem>>, vector<8x128xf32>
    tpu.vector_store %arg7[%c0_3, %c0_4], %4 {strides = array<i32>} : memref<8x768xf32, #tpu.memory_space<vmem>>, vector<8x128xf32>,
    %c0_5 = arith.constant 0 : index
    %c640 = arith.constant 640 : index
    %6 = vector.load %arg7[%c0_5, %c640] : memref<8x768xf32, #tpu.memory_space<vmem>>, vector<8x128xf32>
    tpu.vector_store %arg7[%c0_5, %c640], %4 {strides = array<i32>} : memref<8x768xf32, #tpu.memory_space<vmem>>, vector<8x128xf32>,
    %c0_6 = arith.constant 0 : index
    %c0_7 = arith.constant 0 : index
    %7 = vector.load %arg8[%c0_6, %c0_7] : memref<8x768xf32, #tpu.memory_space<vmem>>, vector<8x128xf32>
    tpu.vector_store %arg8[%c0_6, %c0_7], %4 {strides = array<i32>} : memref<8x768xf32, #tpu.memory_space<vmem>>, vector<8x128xf32>,
    %c0_8 = arith.constant 0 : index
    %c640_9 = arith.constant 640 : index
    %8 = vector.load %arg8[%c0_8, %c640_9] : memref<8x768xf32, #tpu.memory_space<vmem>>, vector<8x128xf32>
    tpu.vector_store %arg8[%c0_8, %c640_9], %4 {strides = array<i32>} : memref<8x768xf32, #tpu.memory_space<vmem>>, vector<8x128xf32>,
    %c0_10 = arith.constant 0 : index
    %c0_11 = arith.constant 0 : index
    %c128 = arith.constant 128 : index
    %9 = vector.load %arg1[%c0_10, %c0_11, %c128] : memref<1x8x768xf32, #tpu.memory_space<vmem>>, vector<1x8x512xf32>
    %10 = vector.shape_cast %9 : vector<1x8x512xf32> to vector<8x512xf32>
    %c0_12 = arith.constant 0 : index
    %c0_13 = arith.constant 0 : index
    %11 = vector.load %arg9[%c0_12, %c0_13] : memref<72x512xf32, #tpu.memory_space<vmem>>, vector<8x512xf32>
    tpu.vector_store %arg9[%c0_12, %c0_13], %10 {strides = array<i32>} : memref<72x512xf32, #tpu.memory_space<vmem>>, vector<8x512xf32>,
    %c0_14 = arith.constant 0 : index
    %c0_15 = arith.constant 0 : index
    %c129 = arith.constant 129 : index
    %12 = vector.load %arg1[%c0_14, %c0_15, %c129] : memref<1x8x768xf32, #tpu.memory_space<vmem>>, vector<1x8x512xf32>
    %13 = vector.shape_cast %12 : vector<1x8x512xf32> to vector<8x512xf32>
    %c8 = arith.constant 8 : index
    %c0_16 = arith.constant 0 : index
    %14 = vector.load %arg9[%c8, %c0_16] : memref<72x512xf32, #tpu.memory_space<vmem>>, vector<8x512xf32>
    tpu.vector_store %arg9[%c8, %c0_16], %13 {strides = array<i32>} : memref<72x512xf32, #tpu.memory_space<vmem>>, vector<8x512xf32>,
    %c0_17 = arith.constant 0 : index
    %c0_18 = arith.constant 0 : index
    %c130 = arith.constant 130 : index
    %15 = vector.load %arg1[%c0_17, %c0_18, %c130] : memref<1x8x768xf32, #tpu.memory_space<vmem>>, vector<1x8x512xf32>
    %16 = vector.shape_cast %15 : vector<1x8x512xf32> to vector<8x512xf32>
    %c16 = arith.constant 16 : index
    %c0_19 = arith.constant 0 : index
    %17 = vector.load %arg9[%c16, %c0_19] : memref<72x512xf32, #tpu.memory_space<vmem>>, vector<8x512xf32>
    tpu.vector_store %arg9[%c16, %c0_19], %16 {strides = array<i32>} : memref<72x512xf32, #tpu.memory_space<vmem>>, vector<8x512xf32>,
    %c0_20 = arith.constant 0 : index
    %c0_21 = arith.constant 0 : index
    %c150 = arith.constant 150 : index
    %18 = vector.load %arg1[%c0_20, %c0_21, %c150] : memref<1x8x768xf32, #tpu.memory_space<vmem>>, vector<1x8x512xf32>
    %19 = vector.shape_cast %18 : vector<1x8x512xf32> to vector<8x512xf32>
    %c24 = arith.constant 24 : index
    %c0_22 = arith.constant 0 : index
    %20 = vector.load %arg9[%c24, %c0_22] : memref<72x512xf32, #tpu.memory_space<vmem>>, vector<8x512xf32>
    tpu.vector_store %arg9[%c24, %c0_22], %19 {strides = array<i32>} : memref<72x512xf32, #tpu.memory_space<vmem>>, vector<8x512xf32>,
    %c0_23 = arith.constant 0 : index
    %c0_24 = arith.constant 0 : index
    %c151 = arith.constant 151 : index
    %21 = vector.load %arg1[%c0_23, %c0_24, %c151] : memref<1x8x768xf32, #tpu.memory_space<vmem>>, vector<1x8x512xf32>
    %22 = vector.shape_cast %21 : vector<1x8x512xf32> to vector<8x512xf32>
    %c32 = arith.constant 32 : index
    %c0_25 = arith.constant 0 : index
    %23 = vector.load %arg9[%c32, %c0_25] : memref<72x512xf32, #tpu.memory_space<vmem>>, vector<8x512xf32>
    tpu.vector_store %arg9[%c32, %c0_25], %22 {strides = array<i32>} : memref<72x512xf32, #tpu.memory_space<vmem>>, vector<8x512xf32>,
    %c0_26 = arith.constant 0 : index
    %c0_27 = arith.constant 0 : index
    %c152 = arith.constant 152 : index
    %24 = vector.load %arg1[%c0_26, %c0_27, %c152] : memref<1x8x768xf32, #tpu.memory_space<vmem>>, vector<1x8x512xf32>
    %25 = vector.shape_cast %24 : vector<1x8x512xf32> to vector<8x512xf32>
    %c40 = arith.constant 40 : index
    %c0_28 = arith.constant 0 : index
    %26 = vector.load %arg9[%c40, %c0_28] : memref<72x512xf32, #tpu.memory_space<vmem>>, vector<8x512xf32>
    tpu.vector_store %arg9[%c40, %c0_28], %25 {strides = array<i32>} : memref<72x512xf32, #tpu.memory_space<vmem>>, vector<8x512xf32>,
    %c0_29 = arith.constant 0 : index
    %c0_30 = arith.constant 0 : index
    %c172 = arith.constant 172 : index
    %27 = vector.load %arg1[%c0_29, %c0_30, %c172] : memref<1x8x768xf32, #tpu.memory_space<vmem>>, vector<1x8x512xf32>
    %28 = vector.shape_cast %27 : vector<1x8x512xf32> to vector<8x512xf32>
    %c48 = arith.constant 48 : index
    %c0_31 = arith.constant 0 : index
    %29 = vector.load %arg9[%c48, %c0_31] : memref<72x512xf32, #tpu.memory_space<vmem>>, vector<8x512xf32>
    tpu.vector_store %arg9[%c48, %c0_31], %28 {strides = array<i32>} : memref<72x512xf32, #tpu.memory_space<vmem>>, vector<8x512xf32>,
    %c0_32 = arith.constant 0 : index
    %c0_33 = arith.constant 0 : index
    %c173 = arith.constant 173 : index
    %30 = vector.load %arg1[%c0_32, %c0_33, %c173] : memref<1x8x768xf32, #tpu.memory_space<vmem>>, vector<1x8x512xf32>
    %31 = vector.shape_cast %30 : vector<1x8x512xf32> to vector<8x512xf32>
    %c56 = arith.constant 56 : index
    %c0_34 = arith.constant 0 : index
    %32 = vector.load %arg9[%c56, %c0_34] : memref<72x512xf32, #tpu.memory_space<vmem>>, vector<8x512xf32>
    tpu.vector_store %arg9[%c56, %c0_34], %31 {strides = array<i32>} : memref<72x512xf32, #tpu.memory_space<vmem>>, vector<8x512xf32>,
    %c0_35 = arith.constant 0 : index
    %c0_36 = arith.constant 0 : index
    %c174 = arith.constant 174 : index
    %33 = vector.load %arg1[%c0_35, %c0_36, %c174] : memref<1x8x768xf32, #tpu.memory_space<vmem>>, vector<1x8x512xf32>
    %34 = vector.shape_cast %33 : vector<1x8x512xf32> to vector<8x512xf32>
    %c64 = arith.constant 64 : index
    %c0_37 = arith.constant 0 : index
    %35 = vector.load %arg9[%c64, %c0_37] : memref<72x512xf32, #tpu.memory_space<vmem>>, vector<8x512xf32>
    tpu.vector_store %arg9[%c64, %c0_37], %34 {strides = array<i32>} : memref<72x512xf32, #tpu.memory_space<vmem>>, vector<8x512xf32>,
    %c0_38 = arith.constant 0 : index
    %c0_39 = arith.constant 0 : index
    %c0_40 = arith.constant 0 : index
    %36 = vector.load %arg3[%c0_38, %c0_39, %c0_40] : memref<6x8x72xf32, #tpu.memory_space<vmem>>, vector<1x8x72xf32>
    %37 = vector.shape_cast %36 : vector<1x8x72xf32> to vector<8x72xf32>
    %c0_41 = arith.constant 0 : index
    %c0_42 = arith.constant 0 : index
    %38 = vector.load %arg9[%c0_41, %c0_42] : memref<72x512xf32, #tpu.memory_space<vmem>>, vector<72x512xf32>
    %cst_43 = arith.constant dense<0.000000e+00> : vector<8x512xf32>
    %39 = tpu.matmul %37, %38, %cst_43 {dimension_numbers = #tpu.dot_dimension_numbers<[1], [0], [0], [1], [0, 0, 1, 1], [], []>} : vector<8x72xf32>, vector<72x512xf32>, vector<8x512xf32> -> vector<8x512xf32>
    %40 = vector.extract_strided_slice %0 {offsets = [0, 0], sizes = [8, 1], strides = [1, 1]} : vector<8x128xf32> to vector<8x1xf32>
    %41 = vector.broadcast %40 : vector<8x1xf32> to vector<8x512xf32>
    %42 = arith.addf %39, %41 : vector<8x512xf32>
    %cst_44 = arith.constant 0.000000e+00 : f32
    %43 = vector.broadcast %cst_44 : f32 to vector<8x512xf32>
    %44 = arith.maximumf %42, %43 : vector<8x512xf32>
    %c0_45 = arith.constant 0 : index
    %c128_46 = arith.constant 128 : index
    %45 = vector.load %arg7[%c0_45, %c128_46] : memref<8x768xf32, #tpu.memory_space<vmem>>, vector<8x512xf32>
    tpu.vector_store %arg7[%c0_45, %c128_46], %44 {strides = array<i32>} : memref<8x768xf32, #tpu.memory_space<vmem>>, vector<8x512xf32>,
    %c0_47 = arith.constant 0 : index
    %c128_48 = arith.constant 128 : index
    %46 = vector.load %arg7[%c0_47, %c128_48] : memref<8x768xf32, #tpu.memory_space<vmem>>, vector<8x512xf32>
    %c0_49 = arith.constant 0 : index
    %c0_50 = arith.constant 0 : index
    %47 = vector.load %arg9[%c0_49, %c0_50] : memref<72x512xf32, #tpu.memory_space<vmem>>, vector<8x512xf32>
    tpu.vector_store %arg9[%c0_49, %c0_50], %46 {strides = array<i32>} : memref<72x512xf32, #tpu.memory_space<vmem>>, vector<8x512xf32>,
    %c0_51 = arith.constant 0 : index
    %c129_52 = arith.constant 129 : index
    %48 = vector.load %arg7[%c0_51, %c129_52] : memref<8x768xf32, #tpu.memory_space<vmem>>, vector<8x512xf32>
    %c8_53 = arith.constant 8 : index
    %c0_54 = arith.constant 0 : index
    %49 = vector.load %arg9[%c8_53, %c0_54] : memref<72x512xf32, #tpu.memory_space<vmem>>, vector<8x512xf32>
    tpu.vector_store %arg9[%c8_53, %c0_54], %48 {strides = array<i32>} : memref<72x512xf32, #tpu.memory_space<vmem>>, vector<8x512xf32>,
    %c0_55 = arith.constant 0 : index
    %c130_56 = arith.constant 130 : index
    %50 = vector.load %arg7[%c0_55, %c130_56] : memref<8x768xf32, #tpu.memory_space<vmem>>, vector<8x512xf32>
    %c16_57 = arith.constant 16 : index
    %c0_58 = arith.constant 0 : index
    %51 = vector.load %arg9[%c16_57, %c0_58] : memref<72x512xf32, #tpu.memory_space<vmem>>, vector<8x512xf32>
    tpu.vector_store %arg9[%c16_57, %c0_58], %50 {strides = array<i32>} : memref<72x512xf32, #tpu.memory_space<vmem>>, vector<8x512xf32>,
    %c0_59 = arith.constant 0 : index
    %c150_60 = arith.constant 150 : index
    %52 = vector.load %arg7[%c0_59, %c150_60] : memref<8x768xf32, #tpu.memory_space<vmem>>, vector<8x512xf32>
    %c24_61 = arith.constant 24 : index
    %c0_62 = arith.constant 0 : index
    %53 = vector.load %arg9[%c24_61, %c0_62] : memref<72x512xf32, #tpu.memory_space<vmem>>, vector<8x512xf32>
    tpu.vector_store %arg9[%c24_61, %c0_62], %52 {strides = array<i32>} : memref<72x512xf32, #tpu.memory_space<vmem>>, vector<8x512xf32>,
    %c0_63 = arith.constant 0 : index
    %c151_64 = arith.constant 151 : index
    %54 = vector.load %arg7[%c0_63, %c151_64] : memref<8x768xf32, #tpu.memory_space<vmem>>, vector<8x512xf32>
    %c32_65 = arith.constant 32 : index
    %c0_66 = arith.constant 0 : index
    %55 = vector.load %arg9[%c32_65, %c0_66] : memref<72x512xf32, #tpu.memory_space<vmem>>, vector<8x512xf32>
    tpu.vector_store %arg9[%c32_65, %c0_66], %54 {strides = array<i32>} : memref<72x512xf32, #tpu.memory_space<vmem>>, vector<8x512xf32>,
    %c0_67 = arith.constant 0 : index
    %c152_68 = arith.constant 152 : index
    %56 = vector.load %arg7[%c0_67, %c152_68] : memref<8x768xf32, #tpu.memory_space<vmem>>, vector<8x512xf32>
    %c40_69 = arith.constant 40 : index
    %c0_70 = arith.constant 0 : index
    %57 = vector.load %arg9[%c40_69, %c0_70] : memref<72x512xf32, #tpu.memory_space<vmem>>, vector<8x512xf32>
    tpu.vector_store %arg9[%c40_69, %c0_70], %56 {strides = array<i32>} : memref<72x512xf32, #tpu.memory_space<vmem>>, vector<8x512xf32>,
    %c0_71 = arith.constant 0 : index
    %c172_72 = arith.constant 172 : index
    %58 = vector.load %arg7[%c0_71, %c172_72] : memref<8x768xf32, #tpu.memory_space<vmem>>, vector<8x512xf32>
    %c48_73 = arith.constant 48 : index
    %c0_74 = arith.constant 0 : index
    %59 = vector.load %arg9[%c48_73, %c0_74] : memref<72x512xf32, #tpu.memory_space<vmem>>, vector<8x512xf32>
    tpu.vector_store %arg9[%c48_73, %c0_74], %58 {strides = array<i32>} : memref<72x512xf32, #tpu.memory_space<vmem>>, vector<8x512xf32>,
    %c0_75 = arith.constant 0 : index
    %c173_76 = arith.constant 173 : index
    %60 = vector.load %arg7[%c0_75, %c173_76] : memref<8x768xf32, #tpu.memory_space<vmem>>, vector<8x512xf32>
    %c56_77 = arith.constant 56 : index
    %c0_78 = arith.constant 0 : index
    %61 = vector.load %arg9[%c56_77, %c0_78] : memref<72x512xf32, #tpu.memory_space<vmem>>, vector<8x512xf32>
    tpu.vector_store %arg9[%c56_77, %c0_78], %60 {strides = array<i32>} : memref<72x512xf32, #tpu.memory_space<vmem>>, vector<8x512xf32>,
    %c0_79 = arith.constant 0 : index
    %c174_80 = arith.constant 174 : index
    %62 = vector.load %arg7[%c0_79, %c174_80] : memref<8x768xf32, #tpu.memory_space<vmem>>, vector<8x512xf32>
    %c64_81 = arith.constant 64 : index
    %c0_82 = arith.constant 0 : index
    %63 = vector.load %arg9[%c64_81, %c0_82] : memref<72x512xf32, #tpu.memory_space<vmem>>, vector<8x512xf32>
    tpu.vector_store %arg9[%c64_81, %c0_82], %62 {strides = array<i32>} : memref<72x512xf32, #tpu.memory_space<vmem>>, vector<8x512xf32>,
    %c1 = arith.constant 1 : index
    %c0_83 = arith.constant 0 : index
    %c0_84 = arith.constant 0 : index
    %64 = vector.load %arg3[%c1, %c0_83, %c0_84] : memref<6x8x72xf32, #tpu.memory_space<vmem>>, vector<1x8x72xf32>
    %65 = vector.shape_cast %64 : vector<1x8x72xf32> to vector<8x72xf32>
    %c0_85 = arith.constant 0 : index
    %c0_86 = arith.constant 0 : index
    %66 = vector.load %arg9[%c0_85, %c0_86] : memref<72x512xf32, #tpu.memory_space<vmem>>, vector<72x512xf32>
    %cst_87 = arith.constant dense<0.000000e+00> : vector<8x512xf32>
    %67 = tpu.matmul %65, %66, %cst_87 {dimension_numbers = #tpu.dot_dimension_numbers<[1], [0], [0], [1], [0, 0, 1, 1], [], []>} : vector<8x72xf32>, vector<72x512xf32>, vector<8x512xf32> -> vector<8x512xf32>
    %68 = vector.extract_strided_slice %0 {offsets = [0, 1], sizes = [8, 1], strides = [1, 1]} : vector<8x128xf32> to vector<8x1xf32>
    %69 = vector.broadcast %68 : vector<8x1xf32> to vector<8x512xf32>
    %70 = arith.addf %67, %69 : vector<8x512xf32>
    %cst_88 = arith.constant 0.000000e+00 : f32
    %71 = vector.broadcast %cst_88 : f32 to vector<8x512xf32>
    %72 = arith.maximumf %70, %71 : vector<8x512xf32>
    %73 = arith.mulf %72, %3 : vector<8x512xf32>
    %c0_89 = arith.constant 0 : index
    %c128_90 = arith.constant 128 : index
    %74 = vector.load %arg8[%c0_89, %c128_90] : memref<8x768xf32, #tpu.memory_space<vmem>>, vector<8x512xf32>
    tpu.vector_store %arg8[%c0_89, %c128_90], %73 {strides = array<i32>} : memref<8x768xf32, #tpu.memory_space<vmem>>, vector<8x512xf32>,
    %c0_91 = arith.constant 0 : index
    %c105 = arith.constant 105 : index
    %75 = vector.load %arg8[%c0_91, %c105] : memref<8x768xf32, #tpu.memory_space<vmem>>, vector<8x512xf32>
    %c0_92 = arith.constant 0 : index
    %c0_93 = arith.constant 0 : index
    %76 = vector.load %arg9[%c0_92, %c0_93] : memref<72x512xf32, #tpu.memory_space<vmem>>, vector<8x512xf32>
    tpu.vector_store %arg9[%c0_92, %c0_93], %75 {strides = array<i32>} : memref<72x512xf32, #tpu.memory_space<vmem>>, vector<8x512xf32>,
    %c0_94 = arith.constant 0 : index
    %c106 = arith.constant 106 : index
    %77 = vector.load %arg8[%c0_94, %c106] : memref<8x768xf32, #tpu.memory_space<vmem>>, vector<8x512xf32>
    %c8_95 = arith.constant 8 : index
    %c0_96 = arith.constant 0 : index
    %78 = vector.load %arg9[%c8_95, %c0_96] : memref<72x512xf32, #tpu.memory_space<vmem>>, vector<8x512xf32>
    tpu.vector_store %arg9[%c8_95, %c0_96], %77 {strides = array<i32>} : memref<72x512xf32, #tpu.memory_space<vmem>>, vector<8x512xf32>,
    %c0_97 = arith.constant 0 : index
    %c107 = arith.constant 107 : index
    %79 = vector.load %arg8[%c0_97, %c107] : memref<8x768xf32, #tpu.memory_space<vmem>>, vector<8x512xf32>
    %c16_98 = arith.constant 16 : index
    %c0_99 = arith.constant 0 : index
    %80 = vector.load %arg9[%c16_98, %c0_99] : memref<72x512xf32, #tpu.memory_space<vmem>>, vector<8x512xf32>
    tpu.vector_store %arg9[%c16_98, %c0_99], %79 {strides = array<i32>} : memref<72x512xf32, #tpu.memory_space<vmem>>, vector<8x512xf32>,
    %c0_100 = arith.constant 0 : index
    %c127 = arith.constant 127 : index
    %81 = vector.load %arg8[%c0_100, %c127] : memref<8x768xf32, #tpu.memory_space<vmem>>, vector<8x512xf32>
    %c24_101 = arith.constant 24 : index
    %c0_102 = arith.constant 0 : index
    %82 = vector.load %arg9[%c24_101, %c0_102] : memref<72x512xf32, #tpu.memory_space<vmem>>, vector<8x512xf32>
    tpu.vector_store %arg9[%c24_101, %c0_102], %81 {strides = array<i32>} : memref<72x512xf32, #tpu.memory_space<vmem>>, vector<8x512xf32>,
    %c0_103 = arith.constant 0 : index
    %c128_104 = arith.constant 128 : index
    %83 = vector.load %arg8[%c0_103, %c128_104] : memref<8x768xf32, #tpu.memory_space<vmem>>, vector<8x512xf32>
    %c32_105 = arith.constant 32 : index
    %c0_106 = arith.constant 0 : index
    %84 = vector.load %arg9[%c32_105, %c0_106] : memref<72x512xf32, #tpu.memory_space<vmem>>, vector<8x512xf32>
    tpu.vector_store %arg9[%c32_105, %c0_106], %83 {strides = array<i32>} : memref<72x512xf32, #tpu.memory_space<vmem>>, vector<8x512xf32>,
    %c0_107 = arith.constant 0 : index
    %c129_108 = arith.constant 129 : index
    %85 = vector.load %arg8[%c0_107, %c129_108] : memref<8x768xf32, #tpu.memory_space<vmem>>, vector<8x512xf32>
    %c40_109 = arith.constant 40 : index
    %c0_110 = arith.constant 0 : index
    %86 = vector.load %arg9[%c40_109, %c0_110] : memref<72x512xf32, #tpu.memory_space<vmem>>, vector<8x512xf32>
    tpu.vector_store %arg9[%c40_109, %c0_110], %85 {strides = array<i32>} : memref<72x512xf32, #tpu.memory_space<vmem>>, vector<8x512xf32>,
    %c0_111 = arith.constant 0 : index
    %c149 = arith.constant 149 : index
    %87 = vector.load %arg8[%c0_111, %c149] : memref<8x768xf32, #tpu.memory_space<vmem>>, vector<8x512xf32>
    %c48_112 = arith.constant 48 : index
    %c0_113 = arith.constant 0 : index
    %88 = vector.load %arg9[%c48_112, %c0_113] : memref<72x512xf32, #tpu.memory_space<vmem>>, vector<8x512xf32>
    tpu.vector_store %arg9[%c48_112, %c0_113], %87 {strides = array<i32>} : memref<72x512xf32, #tpu.memory_space<vmem>>, vector<8x512xf32>,
    %c0_114 = arith.constant 0 : index
    %c150_115 = arith.constant 150 : index
    %89 = vector.load %arg8[%c0_114, %c150_115] : memref<8x768xf32, #tpu.memory_space<vmem>>, vector<8x512xf32>
    %c56_116 = arith.constant 56 : index
    %c0_117 = arith.constant 0 : index
    %90 = vector.load %arg9[%c56_116, %c0_117] : memref<72x512xf32, #tpu.memory_space<vmem>>, vector<8x512xf32>
    tpu.vector_store %arg9[%c56_116, %c0_117], %89 {strides = array<i32>} : memref<72x512xf32, #tpu.memory_space<vmem>>, vector<8x512xf32>,
    %c0_118 = arith.constant 0 : index
    %c151_119 = arith.constant 151 : index
    %91 = vector.load %arg8[%c0_118, %c151_119] : memref<8x768xf32, #tpu.memory_space<vmem>>, vector<8x512xf32>
    %c64_120 = arith.constant 64 : index
    %c0_121 = arith.constant 0 : index
    %92 = vector.load %arg9[%c64_120, %c0_121] : memref<72x512xf32, #tpu.memory_space<vmem>>, vector<8x512xf32>
    tpu.vector_store %arg9[%c64_120, %c0_121], %91 {strides = array<i32>} : memref<72x512xf32, #tpu.memory_space<vmem>>, vector<8x512xf32>,
    %c2 = arith.constant 2 : index
    %c0_122 = arith.constant 0 : index
    %c0_123 = arith.constant 0 : index
    %93 = vector.load %arg3[%c2, %c0_122, %c0_123] : memref<6x8x72xf32, #tpu.memory_space<vmem>>, vector<1x8x72xf32>
    %94 = vector.shape_cast %93 : vector<1x8x72xf32> to vector<8x72xf32>
    %c0_124 = arith.constant 0 : index
    %c0_125 = arith.constant 0 : index
    %95 = vector.load %arg9[%c0_124, %c0_125] : memref<72x512xf32, #tpu.memory_space<vmem>>, vector<72x512xf32>
    %cst_126 = arith.constant dense<0.000000e+00> : vector<8x512xf32>
    %96 = tpu.matmul %94, %95, %cst_126 {dimension_numbers = #tpu.dot_dimension_numbers<[1], [0], [0], [1], [0, 0, 1, 1], [], []>} : vector<8x72xf32>, vector<72x512xf32>, vector<8x512xf32> -> vector<8x512xf32>
    %97 = vector.extract_strided_slice %0 {offsets = [0, 2], sizes = [8, 1], strides = [1, 1]} : vector<8x128xf32> to vector<8x1xf32>
    %98 = vector.broadcast %97 : vector<8x1xf32> to vector<8x512xf32>
    %99 = arith.addf %96, %98 : vector<8x512xf32>
    %cst_127 = arith.constant 0.000000e+00 : f32
    %100 = vector.broadcast %cst_127 : f32 to vector<8x512xf32>
    %101 = arith.maximumf %99, %100 : vector<8x512xf32>
    %102 = arith.mulf %101, %3 : vector<8x512xf32>
    %c0_128 = arith.constant 0 : index
    %c128_129 = arith.constant 128 : index
    %103 = vector.load %arg7[%c0_128, %c128_129] : memref<8x768xf32, #tpu.memory_space<vmem>>, vector<8x512xf32>
    tpu.vector_store %arg7[%c0_128, %c128_129], %102 {strides = array<i32>} : memref<8x768xf32, #tpu.memory_space<vmem>>, vector<8x512xf32>,
    %c0_130 = arith.constant 0 : index
    %c105_131 = arith.constant 105 : index
    %104 = vector.load %arg7[%c0_130, %c105_131] : memref<8x768xf32, #tpu.memory_space<vmem>>, vector<8x512xf32>
    %c0_132 = arith.constant 0 : index
    %c0_133 = arith.constant 0 : index
    %105 = vector.load %arg9[%c0_132, %c0_133] : memref<72x512xf32, #tpu.memory_space<vmem>>, vector<8x512xf32>
    tpu.vector_store %arg9[%c0_132, %c0_133], %104 {strides = array<i32>} : memref<72x512xf32, #tpu.memory_space<vmem>>, vector<8x512xf32>,
    %c0_134 = arith.constant 0 : index
    %c106_135 = arith.constant 106 : index
    %106 = vector.load %arg7[%c0_134, %c106_135] : memref<8x768xf32, #tpu.memory_space<vmem>>, vector<8x512xf32>
    %c8_136 = arith.constant 8 : index
    %c0_137 = arith.constant 0 : index
    %107 = vector.load %arg9[%c8_136, %c0_137] : memref<72x512xf32, #tpu.memory_space<vmem>>, vector<8x512xf32>
    tpu.vector_store %arg9[%c8_136, %c0_137], %106 {strides = array<i32>} : memref<72x512xf32, #tpu.memory_space<vmem>>, vector<8x512xf32>,
    %c0_138 = arith.constant 0 : index
    %c107_139 = arith.constant 107 : index
    %108 = vector.load %arg7[%c0_138, %c107_139] : memref<8x768xf32, #tpu.memory_space<vmem>>, vector<8x512xf32>
    %c16_140 = arith.constant 16 : index
    %c0_141 = arith.constant 0 : index
    %109 = vector.load %arg9[%c16_140, %c0_141] : memref<72x512xf32, #tpu.memory_space<vmem>>, vector<8x512xf32>
    tpu.vector_store %arg9[%c16_140, %c0_141], %108 {strides = array<i32>} : memref<72x512xf32, #tpu.memory_space<vmem>>, vector<8x512xf32>,
    %c0_142 = arith.constant 0 : index
    %c127_143 = arith.constant 127 : index
    %110 = vector.load %arg7[%c0_142, %c127_143] : memref<8x768xf32, #tpu.memory_space<vmem>>, vector<8x512xf32>
    %c24_144 = arith.constant 24 : index
    %c0_145 = arith.constant 0 : index
    %111 = vector.load %arg9[%c24_144, %c0_145] : memref<72x512xf32, #tpu.memory_space<vmem>>, vector<8x512xf32>
    tpu.vector_store %arg9[%c24_144, %c0_145], %110 {strides = array<i32>} : memref<72x512xf32, #tpu.memory_space<vmem>>, vector<8x512xf32>,
    %c0_146 = arith.constant 0 : index
    %c128_147 = arith.constant 128 : index
    %112 = vector.load %arg7[%c0_146, %c128_147] : memref<8x768xf32, #tpu.memory_space<vmem>>, vector<8x512xf32>
    %c32_148 = arith.constant 32 : index
    %c0_149 = arith.constant 0 : index
    %113 = vector.load %arg9[%c32_148, %c0_149] : memref<72x512xf32, #tpu.memory_space<vmem>>, vector<8x512xf32>
    tpu.vector_store %arg9[%c32_148, %c0_149], %112 {strides = array<i32>} : memref<72x512xf32, #tpu.memory_space<vmem>>, vector<8x512xf32>,
    %c0_150 = arith.constant 0 : index
    %c129_151 = arith.constant 129 : index
    %114 = vector.load %arg7[%c0_150, %c129_151] : memref<8x768xf32, #tpu.memory_space<vmem>>, vector<8x512xf32>
    %c40_152 = arith.constant 40 : index
    %c0_153 = arith.constant 0 : index
    %115 = vector.load %arg9[%c40_152, %c0_153] : memref<72x512xf32, #tpu.memory_space<vmem>>, vector<8x512xf32>
    tpu.vector_store %arg9[%c40_152, %c0_153], %114 {strides = array<i32>} : memref<72x512xf32, #tpu.memory_space<vmem>>, vector<8x512xf32>,
    %c0_154 = arith.constant 0 : index
    %c149_155 = arith.constant 149 : index
    %116 = vector.load %arg7[%c0_154, %c149_155] : memref<8x768xf32, #tpu.memory_space<vmem>>, vector<8x512xf32>
    %c48_156 = arith.constant 48 : index
    %c0_157 = arith.constant 0 : index
    %117 = vector.load %arg9[%c48_156, %c0_157] : memref<72x512xf32, #tpu.memory_space<vmem>>, vector<8x512xf32>
    tpu.vector_store %arg9[%c48_156, %c0_157], %116 {strides = array<i32>} : memref<72x512xf32, #tpu.memory_space<vmem>>, vector<8x512xf32>,
    %c0_158 = arith.constant 0 : index
    %c150_159 = arith.constant 150 : index
    %118 = vector.load %arg7[%c0_158, %c150_159] : memref<8x768xf32, #tpu.memory_space<vmem>>, vector<8x512xf32>
    %c56_160 = arith.constant 56 : index
    %c0_161 = arith.constant 0 : index
    %119 = vector.load %arg9[%c56_160, %c0_161] : memref<72x512xf32, #tpu.memory_space<vmem>>, vector<8x512xf32>
    tpu.vector_store %arg9[%c56_160, %c0_161], %118 {strides = array<i32>} : memref<72x512xf32, #tpu.memory_space<vmem>>, vector<8x512xf32>,
    %c0_162 = arith.constant 0 : index
    %c151_163 = arith.constant 151 : index
    %120 = vector.load %arg7[%c0_162, %c151_163] : memref<8x768xf32, #tpu.memory_space<vmem>>, vector<8x512xf32>
    %c64_164 = arith.constant 64 : index
    %c0_165 = arith.constant 0 : index
    %121 = vector.load %arg9[%c64_164, %c0_165] : memref<72x512xf32, #tpu.memory_space<vmem>>, vector<8x512xf32>
    tpu.vector_store %arg9[%c64_164, %c0_165], %120 {strides = array<i32>} : memref<72x512xf32, #tpu.memory_space<vmem>>, vector<8x512xf32>,
    %c3 = arith.constant 3 : index
    %c0_166 = arith.constant 0 : index
    %c0_167 = arith.constant 0 : index
    %122 = vector.load %arg3[%c3, %c0_166, %c0_167] : memref<6x8x72xf32, #tpu.memory_space<vmem>>, vector<1x8x72xf32>
    %123 = vector.shape_cast %122 : vector<1x8x72xf32> to vector<8x72xf32>
    %c0_168 = arith.constant 0 : index
    %c0_169 = arith.constant 0 : index
    %124 = vector.load %arg9[%c0_168, %c0_169] : memref<72x512xf32, #tpu.memory_space<vmem>>, vector<72x512xf32>
    %cst_170 = arith.constant dense<0.000000e+00> : vector<8x512xf32>
    %125 = tpu.matmul %123, %124, %cst_170 {dimension_numbers = #tpu.dot_dimension_numbers<[1], [0], [0], [1], [0, 0, 1, 1], [], []>} : vector<8x72xf32>, vector<72x512xf32>, vector<8x512xf32> -> vector<8x512xf32>
    %126 = vector.extract_strided_slice %0 {offsets = [0, 3], sizes = [8, 1], strides = [1, 1]} : vector<8x128xf32> to vector<8x1xf32>
    %127 = vector.broadcast %126 : vector<8x1xf32> to vector<8x512xf32>
    %128 = arith.addf %125, %127 : vector<8x512xf32>
    %cst_171 = arith.constant 0.000000e+00 : f32
    %129 = vector.broadcast %cst_171 : f32 to vector<8x512xf32>
    %130 = arith.maximumf %128, %129 : vector<8x512xf32>
    %c0_172 = arith.constant 0 : index
    %c0_173 = arith.constant 0 : index
    %131 = vector.load %arg10[%c0_172, %c0_173] : memref<24x512xf32, #tpu.memory_space<vmem>>, vector<8x512xf32>
    tpu.vector_store %arg10[%c0_172, %c0_173], %130 {strides = array<i32>} : memref<24x512xf32, #tpu.memory_space<vmem>>, vector<8x512xf32>,
    %c0_174 = arith.constant 0 : index
    %c59 = arith.constant 59 : index
    %132 = vector.load %arg7[%c0_174, %c59] : memref<8x768xf32, #tpu.memory_space<vmem>>, vector<8x512xf32>
    %c0_175 = arith.constant 0 : index
    %c0_176 = arith.constant 0 : index
    %133 = vector.load %arg9[%c0_175, %c0_176] : memref<72x512xf32, #tpu.memory_space<vmem>>, vector<8x512xf32>
    tpu.vector_store %arg9[%c0_175, %c0_176], %132 {strides = array<i32>} : memref<72x512xf32, #tpu.memory_space<vmem>>, vector<8x512xf32>,
    %c0_177 = arith.constant 0 : index
    %c62 = arith.constant 62 : index
    %134 = vector.load %arg7[%c0_177, %c62] : memref<8x768xf32, #tpu.memory_space<vmem>>, vector<8x512xf32>
    %c8_178 = arith.constant 8 : index
    %c0_179 = arith.constant 0 : index
    %135 = vector.load %arg9[%c8_178, %c0_179] : memref<72x512xf32, #tpu.memory_space<vmem>>, vector<8x512xf32>
    tpu.vector_store %arg9[%c8_178, %c0_179], %134 {strides = array<i32>} : memref<72x512xf32, #tpu.memory_space<vmem>>, vector<8x512xf32>,
    %c0_180 = arith.constant 0 : index
    %c65 = arith.constant 65 : index
    %136 = vector.load %arg7[%c0_180, %c65] : memref<8x768xf32, #tpu.memory_space<vmem>>, vector<8x512xf32>
    %c16_181 = arith.constant 16 : index
    %c0_182 = arith.constant 0 : index
    %137 = vector.load %arg9[%c16_181, %c0_182] : memref<72x512xf32, #tpu.memory_space<vmem>>, vector<8x512xf32>
    tpu.vector_store %arg9[%c16_181, %c0_182], %136 {strides = array<i32>} : memref<72x512xf32, #tpu.memory_space<vmem>>, vector<8x512xf32>,
    %c0_183 = arith.constant 0 : index
    %c125 = arith.constant 125 : index
    %138 = vector.load %arg7[%c0_183, %c125] : memref<8x768xf32, #tpu.memory_space<vmem>>, vector<8x512xf32>
    %c24_184 = arith.constant 24 : index
    %c0_185 = arith.constant 0 : index
    %139 = vector.load %arg9[%c24_184, %c0_185] : memref<72x512xf32, #tpu.memory_space<vmem>>, vector<8x512xf32>
    tpu.vector_store %arg9[%c24_184, %c0_185], %138 {strides = array<i32>} : memref<72x512xf32, #tpu.memory_space<vmem>>, vector<8x512xf32>,
    %c0_186 = arith.constant 0 : index
    %c128_187 = arith.constant 128 : index
    %140 = vector.load %arg7[%c0_186, %c128_187] : memref<8x768xf32, #tpu.memory_space<vmem>>, vector<8x512xf32>
    %c32_188 = arith.constant 32 : index
    %c0_189 = arith.constant 0 : index
    %141 = vector.load %arg9[%c32_188, %c0_189] : memref<72x512xf32, #tpu.memory_space<vmem>>, vector<8x512xf32>
    tpu.vector_store %arg9[%c32_188, %c0_189], %140 {strides = array<i32>} : memref<72x512xf32, #tpu.memory_space<vmem>>, vector<8x512xf32>,
    %c0_190 = arith.constant 0 : index
    %c131 = arith.constant 131 : index
    %142 = vector.load %arg7[%c0_190, %c131] : memref<8x768xf32, #tpu.memory_space<vmem>>, vector<8x512xf32>
    %c40_191 = arith.constant 40 : index
    %c0_192 = arith.constant 0 : index
    %143 = vector.load %arg9[%c40_191, %c0_192] : memref<72x512xf32, #tpu.memory_space<vmem>>, vector<8x512xf32>
    tpu.vector_store %arg9[%c40_191, %c0_192], %142 {strides = array<i32>} : memref<72x512xf32, #tpu.memory_space<vmem>>, vector<8x512xf32>,
    %c0_193 = arith.constant 0 : index
    %c191 = arith.constant 191 : index
    %144 = vector.load %arg7[%c0_193, %c191] : memref<8x768xf32, #tpu.memory_space<vmem>>, vector<8x512xf32>
    %c48_194 = arith.constant 48 : index
    %c0_195 = arith.constant 0 : index
    %145 = vector.load %arg9[%c48_194, %c0_195] : memref<72x512xf32, #tpu.memory_space<vmem>>, vector<8x512xf32>
    tpu.vector_store %arg9[%c48_194, %c0_195], %144 {strides = array<i32>} : memref<72x512xf32, #tpu.memory_space<vmem>>, vector<8x512xf32>,
    %c0_196 = arith.constant 0 : index
    %c194 = arith.constant 194 : index
    %146 = vector.load %arg7[%c0_196, %c194] : memref<8x768xf32, #tpu.memory_space<vmem>>, vector<8x512xf32>
    %c56_197 = arith.constant 56 : index
    %c0_198 = arith.constant 0 : index
    %147 = vector.load %arg9[%c56_197, %c0_198] : memref<72x512xf32, #tpu.memory_space<vmem>>, vector<8x512xf32>
    tpu.vector_store %arg9[%c56_197, %c0_198], %146 {strides = array<i32>} : memref<72x512xf32, #tpu.memory_space<vmem>>, vector<8x512xf32>,
    %c0_199 = arith.constant 0 : index
    %c197 = arith.constant 197 : index
    %148 = vector.load %arg7[%c0_199, %c197] : memref<8x768xf32, #tpu.memory_space<vmem>>, vector<8x512xf32>
    %c64_200 = arith.constant 64 : index
    %c0_201 = arith.constant 0 : index
    %149 = vector.load %arg9[%c64_200, %c0_201] : memref<72x512xf32, #tpu.memory_space<vmem>>, vector<8x512xf32>
    tpu.vector_store %arg9[%c64_200, %c0_201], %148 {strides = array<i32>} : memref<72x512xf32, #tpu.memory_space<vmem>>, vector<8x512xf32>,
    %c4 = arith.constant 4 : index
    %c0_202 = arith.constant 0 : index
    %c0_203 = arith.constant 0 : index
    %150 = vector.load %arg3[%c4, %c0_202, %c0_203] : memref<6x8x72xf32, #tpu.memory_space<vmem>>, vector<1x8x72xf32>
    %151 = vector.shape_cast %150 : vector<1x8x72xf32> to vector<8x72xf32>
    %c0_204 = arith.constant 0 : index
    %c0_205 = arith.constant 0 : index
    %152 = vector.load %arg9[%c0_204, %c0_205] : memref<72x512xf32, #tpu.memory_space<vmem>>, vector<72x512xf32>
    %cst_206 = arith.constant dense<0.000000e+00> : vector<8x512xf32>
    %153 = tpu.matmul %151, %152, %cst_206 {dimension_numbers = #tpu.dot_dimension_numbers<[1], [0], [0], [1], [0, 0, 1, 1], [], []>} : vector<8x72xf32>, vector<72x512xf32>, vector<8x512xf32> -> vector<8x512xf32>
    %154 = vector.extract_strided_slice %0 {offsets = [0, 4], sizes = [8, 1], strides = [1, 1]} : vector<8x128xf32> to vector<8x1xf32>
    %155 = vector.broadcast %154 : vector<8x1xf32> to vector<8x512xf32>
    %156 = arith.addf %153, %155 : vector<8x512xf32>
    %cst_207 = arith.constant 0.000000e+00 : f32
    %157 = vector.broadcast %cst_207 : f32 to vector<8x512xf32>
    %158 = arith.maximumf %156, %157 : vector<8x512xf32>
    %c8_208 = arith.constant 8 : index
    %c0_209 = arith.constant 0 : index
    %159 = vector.load %arg10[%c8_208, %c0_209] : memref<24x512xf32, #tpu.memory_space<vmem>>, vector<8x512xf32>
    tpu.vector_store %arg10[%c8_208, %c0_209], %158 {strides = array<i32>} : memref<24x512xf32, #tpu.memory_space<vmem>>, vector<8x512xf32>,
    %c0_210 = arith.constant 0 : index
    %c13 = arith.constant 13 : index
    %160 = vector.load %arg7[%c0_210, %c13] : memref<8x768xf32, #tpu.memory_space<vmem>>, vector<8x512xf32>
    %c0_211 = arith.constant 0 : index
    %c0_212 = arith.constant 0 : index
    %161 = vector.load %arg9[%c0_211, %c0_212] : memref<72x512xf32, #tpu.memory_space<vmem>>, vector<8x512xf32>
    tpu.vector_store %arg9[%c0_211, %c0_212], %160 {strides = array<i32>} : memref<72x512xf32, #tpu.memory_space<vmem>>, vector<8x512xf32>,
    %c0_213 = arith.constant 0 : index
    %c18 = arith.constant 18 : index
    %162 = vector.load %arg7[%c0_213, %c18] : memref<8x768xf32, #tpu.memory_space<vmem>>, vector<8x512xf32>
    %c8_214 = arith.constant 8 : index
    %c0_215 = arith.constant 0 : index
    %163 = vector.load %arg9[%c8_214, %c0_215] : memref<72x512xf32, #tpu.memory_space<vmem>>, vector<8x512xf32>
    tpu.vector_store %arg9[%c8_214, %c0_215], %162 {strides = array<i32>} : memref<72x512xf32, #tpu.memory_space<vmem>>, vector<8x512xf32>,
    %c0_216 = arith.constant 0 : index
    %c23 = arith.constant 23 : index
    %164 = vector.load %arg7[%c0_216, %c23] : memref<8x768xf32, #tpu.memory_space<vmem>>, vector<8x512xf32>
    %c16_217 = arith.constant 16 : index
    %c0_218 = arith.constant 0 : index
    %165 = vector.load %arg9[%c16_217, %c0_218] : memref<72x512xf32, #tpu.memory_space<vmem>>, vector<8x512xf32>
    tpu.vector_store %arg9[%c16_217, %c0_218], %164 {strides = array<i32>} : memref<72x512xf32, #tpu.memory_space<vmem>>, vector<8x512xf32>,
    %c0_219 = arith.constant 0 : index
    %c123 = arith.constant 123 : index
    %166 = vector.load %arg7[%c0_219, %c123] : memref<8x768xf32, #tpu.memory_space<vmem>>, vector<8x512xf32>
    %c24_220 = arith.constant 24 : index
    %c0_221 = arith.constant 0 : index
    %167 = vector.load %arg9[%c24_220, %c0_221] : memref<72x512xf32, #tpu.memory_space<vmem>>, vector<8x512xf32>
    tpu.vector_store %arg9[%c24_220, %c0_221], %166 {strides = array<i32>} : memref<72x512xf32, #tpu.memory_space<vmem>>, vector<8x512xf32>,
    %c0_222 = arith.constant 0 : index
    %c128_223 = arith.constant 128 : index
    %168 = vector.load %arg7[%c0_222, %c128_223] : memref<8x768xf32, #tpu.memory_space<vmem>>, vector<8x512xf32>
    %c32_224 = arith.constant 32 : index
    %c0_225 = arith.constant 0 : index
    %169 = vector.load %arg9[%c32_224, %c0_225] : memref<72x512xf32, #tpu.memory_space<vmem>>, vector<8x512xf32>
    tpu.vector_store %arg9[%c32_224, %c0_225], %168 {strides = array<i32>} : memref<72x512xf32, #tpu.memory_space<vmem>>, vector<8x512xf32>,
    %c0_226 = arith.constant 0 : index
    %c133 = arith.constant 133 : index
    %170 = vector.load %arg7[%c0_226, %c133] : memref<8x768xf32, #tpu.memory_space<vmem>>, vector<8x512xf32>
    %c40_227 = arith.constant 40 : index
    %c0_228 = arith.constant 0 : index
    %171 = vector.load %arg9[%c40_227, %c0_228] : memref<72x512xf32, #tpu.memory_space<vmem>>, vector<8x512xf32>
    tpu.vector_store %arg9[%c40_227, %c0_228], %170 {strides = array<i32>} : memref<72x512xf32, #tpu.memory_space<vmem>>, vector<8x512xf32>,
    %c0_229 = arith.constant 0 : index
    %c233 = arith.constant 233 : index
    %172 = vector.load %arg7[%c0_229, %c233] : memref<8x768xf32, #tpu.memory_space<vmem>>, vector<8x512xf32>
    %c48_230 = arith.constant 48 : index
    %c0_231 = arith.constant 0 : index
    %173 = vector.load %arg9[%c48_230, %c0_231] : memref<72x512xf32, #tpu.memory_space<vmem>>, vector<8x512xf32>
    tpu.vector_store %arg9[%c48_230, %c0_231], %172 {strides = array<i32>} : memref<72x512xf32, #tpu.memory_space<vmem>>, vector<8x512xf32>,
    %c0_232 = arith.constant 0 : index
    %c238 = arith.constant 238 : index
    %174 = vector.load %arg7[%c0_232, %c238] : memref<8x768xf32, #tpu.memory_space<vmem>>, vector<8x512xf32>
    %c56_233 = arith.constant 56 : index
    %c0_234 = arith.constant 0 : index
    %175 = vector.load %arg9[%c56_233, %c0_234] : memref<72x512xf32, #tpu.memory_space<vmem>>, vector<8x512xf32>
    tpu.vector_store %arg9[%c56_233, %c0_234], %174 {strides = array<i32>} : memref<72x512xf32, #tpu.memory_space<vmem>>, vector<8x512xf32>,
    %c0_235 = arith.constant 0 : index
    %c243 = arith.constant 243 : index
    %176 = vector.load %arg7[%c0_235, %c243] : memref<8x768xf32, #tpu.memory_space<vmem>>, vector<8x512xf32>
    %c64_236 = arith.constant 64 : index
    %c0_237 = arith.constant 0 : index
    %177 = vector.load %arg9[%c64_236, %c0_237] : memref<72x512xf32, #tpu.memory_space<vmem>>, vector<8x512xf32>
    tpu.vector_store %arg9[%c64_236, %c0_237], %176 {strides = array<i32>} : memref<72x512xf32, #tpu.memory_space<vmem>>, vector<8x512xf32>,
    %c5 = arith.constant 5 : index
    %c0_238 = arith.constant 0 : index
    %c0_239 = arith.constant 0 : index
    %178 = vector.load %arg3[%c5, %c0_238, %c0_239] : memref<6x8x72xf32, #tpu.memory_space<vmem>>, vector<1x8x72xf32>
    %179 = vector.shape_cast %178 : vector<1x8x72xf32> to vector<8x72xf32>
    %c0_240 = arith.constant 0 : index
    %c0_241 = arith.constant 0 : index
    %180 = vector.load %arg9[%c0_240, %c0_241] : memref<72x512xf32, #tpu.memory_space<vmem>>, vector<72x512xf32>
    %cst_242 = arith.constant dense<0.000000e+00> : vector<8x512xf32>
    %181 = tpu.matmul %179, %180, %cst_242 {dimension_numbers = #tpu.dot_dimension_numbers<[1], [0], [0], [1], [0, 0, 1, 1], [], []>} : vector<8x72xf32>, vector<72x512xf32>, vector<8x512xf32> -> vector<8x512xf32>
    %182 = vector.extract_strided_slice %0 {offsets = [0, 5], sizes = [8, 1], strides = [1, 1]} : vector<8x128xf32> to vector<8x1xf32>
    %183 = vector.broadcast %182 : vector<8x1xf32> to vector<8x512xf32>
    %184 = arith.addf %181, %183 : vector<8x512xf32>
    %cst_243 = arith.constant 0.000000e+00 : f32
    %185 = vector.broadcast %cst_243 : f32 to vector<8x512xf32>
    %186 = arith.maximumf %184, %185 : vector<8x512xf32>
    %c16_244 = arith.constant 16 : index
    %c0_245 = arith.constant 0 : index
    %187 = vector.load %arg10[%c16_244, %c0_245] : memref<24x512xf32, #tpu.memory_space<vmem>>, vector<8x512xf32>
    tpu.vector_store %arg10[%c16_244, %c0_245], %186 {strides = array<i32>} : memref<24x512xf32, #tpu.memory_space<vmem>>, vector<8x512xf32>,
    %c0_246 = arith.constant 0 : index
    %c0_247 = arith.constant 0 : index
    %188 = vector.load %arg4[%c0_246, %c0_247] : memref<8x24xf32, #tpu.memory_space<vmem>>, vector<8x24xf32>
    %c0_248 = arith.constant 0 : index
    %c0_249 = arith.constant 0 : index
    %189 = vector.load %arg10[%c0_248, %c0_249] : memref<24x512xf32, #tpu.memory_space<vmem>>, vector<24x512xf32>
    %cst_250 = arith.constant dense<0.000000e+00> : vector<8x512xf32>
    %190 = tpu.matmul %188, %189, %cst_250 {dimension_numbers = #tpu.dot_dimension_numbers<[1], [0], [0], [1], [0, 0, 1, 1], [], []>} : vector<8x24xf32>, vector<24x512xf32>, vector<8x512xf32> -> vector<8x512xf32>
    %191 = vector.extract_strided_slice %0 {offsets = [0, 6], sizes = [8, 1], strides = [1, 1]} : vector<8x128xf32> to vector<8x1xf32>
    %192 = vector.broadcast %191 : vector<8x1xf32> to vector<8x512xf32>
    %193 = arith.addf %190, %192 : vector<8x512xf32>
    %cst_251 = arith.constant 0.000000e+00 : f32
    %194 = vector.broadcast %cst_251 : f32 to vector<8x512xf32>
    %195 = arith.maximumf %193, %194 : vector<8x512xf32>
    %196 = arith.addf %195, %73 : vector<8x512xf32>
    %197 = vector.extract_strided_slice %0 {offsets = [0, 7], sizes = [8, 1], strides = [1, 1]} : vector<8x128xf32> to vector<8x1xf32>
    %198 = vector.broadcast %197 : vector<8x1xf32> to vector<8x512xf32>
    %199 = arith.mulf %196, %198 : vector<8x512xf32>
    %200 = vector.extract_strided_slice %0 {offsets = [0, 8], sizes = [8, 1], strides = [1, 1]} : vector<8x128xf32> to vector<8x1xf32>
    %201 = vector.broadcast %200 : vector<8x1xf32> to vector<8x512xf32>
    %202 = arith.addf %199, %201 : vector<8x512xf32>
    %cst_252 = arith.constant 5.000000e-01 : f32
    %203 = vector.broadcast %cst_252 : f32 to vector<8x512xf32>
    %204 = arith.mulf %203, %202 : vector<8x512xf32>
    %205 = arith.mulf %202, %202 : vector<8x512xf32>
    %206 = arith.mulf %205, %202 : vector<8x512xf32>
    %cst_253 = arith.constant 4.471500e-02 : f32
    %207 = vector.broadcast %cst_253 : f32 to vector<8x512xf32>
    %208 = arith.mulf %207, %206 : vector<8x512xf32>
    %209 = arith.addf %202, %208 : vector<8x512xf32>
    %cst_254 = arith.constant 0.797884583 : f32
    %210 = vector.broadcast %cst_254 : f32 to vector<8x512xf32>
    %211 = arith.mulf %210, %209 : vector<8x512xf32>
    %212 = math.tanh %211 : vector<8x512xf32>
    %cst_255 = arith.constant 1.000000e+00 : f32
    %213 = vector.broadcast %cst_255 : f32 to vector<8x512xf32>
    %214 = arith.addf %213, %212 : vector<8x512xf32>
    %215 = arith.mulf %204, %214 : vector<8x512xf32>
    %c0_256 = arith.constant 0 : index
    %c0_257 = arith.constant 0 : index
    %c0_258 = arith.constant 0 : index
    %216 = vector.load %arg6[%c0_256, %c0_257, %c0_258] : memref<1x8x512xf32, #tpu.memory_space<vmem>>, vector<1x8x512xf32>
    %217 = vector.shape_cast %216 : vector<1x8x512xf32> to vector<8x512xf32>
    %218 = vector.shape_cast %215 : vector<8x512xf32> to vector<1x8x512xf32>
    tpu.vector_store %arg6[%c0_256, %c0_257, %c0_258], %218 {strides = array<i32>} : memref<1x8x512xf32, #tpu.memory_space<vmem>>, vector<1x8x512xf32>,
    return
  }
  func.func @transform_0(%arg0: i32) -> (i32, i32, i32) {
    %c0_i32 = arith.constant 0 : i32
    %c0_i32_0 = arith.constant 0 : i32
    %c0_i32_1 = arith.constant 0 : i32
    return %arg0, %c0_i32, %c0_i32_0 : i32, i32, i32
  }
  func.func @transform_1(%arg0: i32) -> (i32, i32) {
    %c0_i32 = arith.constant 0 : i32
    %c0_i32_0 = arith.constant 0 : i32
    %c0_i32_1 = arith.constant 0 : i32
    return %c0_i32, %c0_i32_0 : i32, i32
  }
  func.func @transform_2(%arg0: i32) -> (i32, i32, i32) {
    %c0_i32 = arith.constant 0 : i32
    %c0_i32_0 = arith.constant 0 : i32
    %c0_i32_1 = arith.constant 0 : i32
    %c0_i32_2 = arith.constant 0 : i32
    return %c0_i32, %c0_i32_0, %c0_i32_1 : i32, i32, i32
  }
  func.func @transform_3(%arg0: i32) -> (i32, i32) {
    %c0_i32 = arith.constant 0 : i32
    %c0_i32_0 = arith.constant 0 : i32
    %c0_i32_1 = arith.constant 0 : i32
    return %c0_i32, %c0_i32_0 : i32, i32
  }
  func.func @transform_4(%arg0: i32) -> (i32, i32) {
    %c0_i32 = arith.constant 0 : i32
    %c0_i32_0 = arith.constant 0 : i32
    %c0_i32_1 = arith.constant 0 : i32
    return %c0_i32, %c0_i32_0 : i32, i32
  }
  func.func @transform_5(%arg0: i32) -> (i32, i32, i32) {
    %c0_i32 = arith.constant 0 : i32
    %c0_i32_0 = arith.constant 0 : i32
    %c0_i32_1 = arith.constant 0 : i32
    return %arg0, %c0_i32, %c0_i32_0 : i32, i32, i32
  }
}

</mosaic_0001>

<bundles_post_ra>
// kernel: _lambda_.1
= control target key start
LH: loop header
LB: loop body
LE: loop exit
PB: predicated region body
PF: predicated region fallthrough
CT: control target
= control target key end

     0   :  { %s3499_s18 = smov 0   ;;  %s4649_s0 = inlined_call_operand.vmem [shape: f32[2,8,768], index: 0, kind: input, shape index: {}]   ;;  %s4650_s1 = inlined_call_operand.vmem [shape: f32[1,512], index: 1, kind: input, shape index: {}]   ;;  %s4651_s2 = inlined_call_operand.vmem [shape: f32[6,8,72], index: 2, kind: input, shape index: {}]   ;;  %s4652_s3 = inlined_call_operand.vmem [shape: f32[8,24], index: 3, kind: input, shape index: {}]   ;;  %s4653_s4 = inlined_call_operand.vmem [shape: f32[8,128], index: 4, kind: input, shape index: {}]   ;;  %s4654_s5 = inlined_call_operand.vmem [shape: f32[2,8,512], index: 5, kind: output, shape index: {}]  }
   0x1 LB: > { %s3324_s19 = sadd.s32 4294967295, %s3430_s18   ;;  %p3328_p0 = scmp.ge.s32.totalorder %s3430_s18, 1  ;;  %s3430_s18 = sphi %s3499_s18, %s15_s18  }
   0x2   : > { %p187_p1 = scmp.lt.s32.totalorder %s3430_s18, 3 }
   0x4   : > { %p188_p2 = pnand %p3328_p0, %p187_p1 }
   0x6   : > { %191 = sbr.rel (%p188_p2) target bundleno = 1922 (0x782), region = 40 }
   0xb   : > { %p215_p3 = scmp.lt.s32.totalorder %s3324_s19, 1  ;;  %s3432_s24 = smov 82   ;;  %v4655_v5 = vmov 0.0   ;;  %v3441_v6 = vmov 0   ;;  %v3598_v7 = vld [vmem:[%s4653_s4] sm:$0xff]  ;;  %vm511_vm0 = vcmask 670720  }
   0xc   : > { %s3433_s25 = smov 83   ;;  %s3434_s26 = smov 84   ;;  %634 = vmatprep.mubr.f32.mxu0 %v4655_v5  ;;  %705 = vmatprep.mubr.f32.mxu1 %v4655_v5  ;;  %vm478_vm1 = vcmask 678912   ;;  %vm445_vm2 = vcmask 687104   ;;  %vm412_vm3 = vcmask 850944   ;;  %vm379_vm4 = vcmask 859136  }
   0xd   : > { %s4728_s19 = smov (!%p215_p3, %s3324_s19), 1  ;;  %s3435_s27 = smov 104   ;;  %3400 = vset.pattern.permute.xlu0 %v3441_v6  ;;  %vm346_vm5 = vcmask 867328   ;;  %vm313_vm6 = vcmask 1031168   ;;  %vm280_vm7 = vcmask 1039360   ;;  %vm566_vm8 = vcmask 588800  }
   0xe   : > { %s3354_s20 = smul.u32 48, %s4728_s19  ;;  %s3436_s28 = smov 105   ;;  %vm1375_vm9 = vcmask 875520   ;;  %vm1302_vm10 = vcmask 7168   ;;  %vm1269_vm11 = vcmask 171008   ;;  %vm1236_vm12 = vcmask 179200  }
   0xf   : > { %s3437_s29 = smov 106   ;;  %s3438_s30 = smov 126   ;;  %vm1203_vm13 = vcmask 187392   ;;  %vm2369_vm14 = vcmask 482304   ;;  %vm2336_vm15 = vcmask 506880  }
  0x10   : > { %s219_s23 = scalar_lea.vmem %s4649_s0, %s3354_s20  ;;  %s3440_s6 = smov 127  }
  0x11   : > { %v3513_v0 = vld [vmem:[%s219_s23 + $0x20] sm:$0xff]  ;;  %v3515_v1 = vld [vmem:[%s219_s23 + $0x10] sm:$0xff]  ;;  %v495_v2 = vld [vmem:[%s219_s23 + $0x28] sm:$0xff]  ;;  %s3443_s11 = smov 107   ;;  %s3444_s14 = smov 1  }
  0x12   : > { %507 = vrot.lane.b32.xlu1 %v3513_v0, %s3432_s24  ;;  %503 = vrot.lane.b32.xlu0 %v3515_v1, %s3432_s24  ;;  %v3521_v3 = vld [vmem:[%s219_s23 + $0x18] sm:$0xff]  ;;  %v3526_v4 = vld [vmem:[%s219_s23 + $0x8] sm:$0xff]  ;;  %s3445_s15 = smov 21   ;;  %s3446_s16 = smov 22  }
  0x13   : > { %s3447_s21 = smov 23   ;;  %s3449_s22 = smov 62  }
  0x14   : > { %s3450_s23 = smov 125   ;;  %s3456_s7 = smov 18  }
  0x15   : > { %s3457_s8 = smov 69   ;;  %s3458_s9 = smov 13  }
  0x16   : > { %509 = vrot.lane.b32.xlu1 %v495_v2, %s3432_s24  ;;  %505 = vrot.lane.b32.xlu0 %v3521_v3, %s3432_s24  ;;  %s3459_s10 = smov 123   ;;  %s3460_s12 = smov 5  }
  0x17   : > { %s3461_s20 = smov 110   ;;  %s3462_s13 = smov 115  }
  0x1a   : > { %501 = vrot.lane.b32.xlu0 %v3526_v4, %s3432_s24  ;;  %470 = vrot.lane.b32.xlu1 %v3515_v1, %s3433_s25 }
  0x1e   : > { %472 = vrot.lane.b32.xlu0 %v3521_v3, %s3433_s25  ;;  %474 = vrot.lane.b32.xlu1 %v3513_v0, %s3433_s25 }
  0x22   : > { %476 = vrot.lane.b32.xlu0 %v495_v2, %s3433_s25  ;;  %468 = vrot.lane.b32.xlu1 %v3526_v4, %s3433_s25 }
  0x26   : > { %439 = vrot.lane.b32.xlu1 %v3521_v3, %s3434_s26  ;;  %437 = vrot.lane.b32.xlu0 %v3515_v1, %s3434_s26 }
  0x2a   : > { %443 = vrot.lane.b32.xlu1 %v495_v2, %s3434_s26  ;;  %441 = vrot.lane.b32.xlu0 %v3513_v0, %s3434_s26 }
  0x2e   : > { %435 = vrot.lane.b32.xlu0 %v3526_v4, %s3434_s26  ;;  %404 = vrot.lane.b32.xlu1 %v3515_v1, %s3435_s27 }
  0x32   : > { %406 = vrot.lane.b32.xlu0 %v3521_v3, %s3435_s27  ;;  %408 = vrot.lane.b32.xlu1 %v3513_v0, %s3435_s27 }
  0x36   : > { %410 = vrot.lane.b32.xlu0 %v495_v2, %s3435_s27  ;;  %402 = vrot.lane.b32.xlu1 %v3526_v4, %s3435_s27 }
  0x3a   : > { %373 = vrot.lane.b32.xlu1 %v3521_v3, %s3436_s28  ;;  %371 = vrot.lane.b32.xlu0 %v3515_v1, %s3436_s28 }
  0x3e   : > { %377 = vrot.lane.b32.xlu1 %v495_v2, %s3436_s28  ;;  %375 = vrot.lane.b32.xlu0 %v3513_v0, %s3436_s28 }
  0x42   : > { %369 = vrot.lane.b32.xlu0 %v3526_v4, %s3436_s28  ;;  %338 = vrot.lane.b32.xlu1 %v3515_v1, %s3437_s29 }
  0x46   : > { %340 = vrot.lane.b32.xlu0 %v3521_v3, %s3437_s29  ;;  %342 = vrot.lane.b32.xlu1 %v3513_v0, %s3437_s29 }
  0x4a   : > { %344 = vrot.lane.b32.xlu0 %v495_v2, %s3437_s29  ;;  %336 = vrot.lane.b32.xlu1 %v3526_v4, %s3437_s29 }
  0x4e   : > { %307 = vrot.lane.b32.xlu1 %v3521_v3, %s3438_s30  ;;  %305 = vrot.lane.b32.xlu0 %v3515_v1, %s3438_s30 }
  0x52   : > { %311 = vrot.lane.b32.xlu1 %v495_v2, %s3438_s30  ;;  %309 = vrot.lane.b32.xlu0 %v3513_v0, %s3438_s30 }
  0x56   : > { %303 = vrot.lane.b32.xlu0 %v3526_v4, %s3438_s30  ;;  %272 = vrot.lane.b32.xlu1 %v3515_v1, %s3440_s6 }
  0x5a   : > { %274 = vrot.lane.b32.xlu0 %v3521_v3, %s3440_s6  ;;  %276 = vrot.lane.b32.xlu1 %v3513_v0, %s3440_s6 }
  0x5e   : > { %278 = vrot.lane.b32.xlu0 %v495_v2, %s3440_s6  ;;  %270 = vrot.lane.b32.xlu1 %v3526_v4, %s3440_s6 }
  0x62   : > { %563 = vperm.xlu0 %3400, %v3598_v7   ;;  %970 = vrot.lane.b32.xlu1 %v4655_v5, %s3432_s24 }
  0x66   : > { %938 = vrot.lane.b32.xlu0 %v4655_v5, %s3433_s25  ;;  %906 = vrot.lane.b32.xlu1 %v4655_v5, %s3434_s26 }
  0x6a   : > { %874 = vrot.lane.b32.xlu0 %v4655_v5, %s3435_s27  ;;  %842 = vrot.lane.b32.xlu1 %v4655_v5, %s3436_s28 }
  0x6e   : > { %810 = vrot.lane.b32.xlu0 %v4655_v5, %s3437_s29  ;;  %778 = vrot.lane.b32.xlu1 %v4655_v5, %s3438_s30 }
  0x84   : > { %v508_v8 = vpop.permute.xlu1 %507  ;;  %v504_v9 = vpop.permute.xlu0 %503 }
  0x88   : > { %v510_v10 = vpop.permute.xlu1 %509  ;;  %v506_v11 = vpop.permute.xlu0 %505 }
  0x89   : > { %v513_v12 = vsel %vm511_vm0, %v504_v9, %v506_v11  ;;  %v515_v13 = vsel %vm511_vm0, %v508_v8, %v510_v10  ;;  %v514_v14 = vsel %vm511_vm0, %v506_v11, %v508_v8 }
  0x8a   : > { %584 = vmatprep.subr.mxu0 %v513_v12  ;;  %655 = vmatprep.subr.mxu1 %v515_v13 }
  0x8b   : > { %656 = vmatpush1.msra.mxu1 %v514_v14 }
  0x8c   : > { %v502_v15 = vpop.permute.xlu0 %501  ;;  %v471_v16 = vpop.permute.xlu1 %470 }
  0x8d   : > { %v512_v17 = vsel %vm511_vm0, %v502_v15, %v504_v9 }
  0x8e   : > { %585 = vmatpush1.msra.mxu0 %v512_v17 }
  0x90   : > { %v473_v18 = vpop.permute.xlu0 %472  ;;  %v475_v19 = vpop.permute.xlu1 %474 }
  0x91   : > { %v480_v20 = vsel %vm478_vm1, %v471_v16, %v473_v18  ;;  %v481_v25 = vsel %vm478_vm1, %v473_v18, %v475_v19 }
  0x92   : > { %586 = vmatprep.subr.mxu0 %v480_v20 }
  0x94   : > { %v477_v21 = vpop.permute.xlu0 %476  ;;  %v469_v22 = vpop.permute.xlu1 %468 }
  0x95   : > { %v479_v23 = vsel %vm478_vm1, %v469_v22, %v471_v16  ;;  %v482_v24 = vsel %vm478_vm1, %v475_v19, %v477_v21  ;;  %v524_v22 = vld [vmem:[%s4651_s2] sm:$0xff] }
  0x96   : > { %587 = vmatpush1.msra.mxu0 %v479_v23  ;;  %657 = vmatprep.subr.mxu1 %v482_v24 }
  0x97   : > { %658 = vmatpush1.msra.mxu1 %v481_v25 }
  0x98   : > { %v440_v26 = vpop.permute.xlu1 %439  ;;  %v438_v27 = vpop.permute.xlu0 %437 }
  0x99   : > { %v447_v28 = vsel %vm445_vm2, %v438_v27, %v440_v26 }
  0x9a   : > { %588 = vmatprep.subr.mxu0 %v447_v28 }
  0x9c   : > { %v444_v29 = vpop.permute.xlu1 %443  ;;  %v442_v30 = vpop.permute.xlu0 %441 }
  0x9d   : > { %v449_v31 = vsel %vm445_vm2, %v442_v30, %v444_v29  ;;  %v448_v32 = vsel %vm445_vm2, %v440_v26, %v442_v30 }
  0x9e   : > { %659 = vmatprep.subr.mxu1 %v449_v31 }
  0x9f   : > { %660 = vmatpush1.msra.mxu1 %v448_v32  ;;  %v3442_v32 = vmov 1  }
  0xa0   : > { %v436_v33 = vpop.permute.xlu0 %435  ;;  %v405_v34 = vpop.permute.xlu1 %404  ;;  %3401 = vset.pattern.permute.xlu0 %v3442_v32 }
  0xa1   : > { %v446_v35 = vsel %vm445_vm2, %v436_v33, %v438_v27 }
  0xa2   : > { %589 = vmatpush1.msra.mxu0 %v446_v35 }
  0xa4   : > { %v407_v36 = vpop.permute.xlu0 %406  ;;  %v409_v37 = vpop.permute.xlu1 %408 }
  0xa5   : > { %v414_v38 = vsel %vm412_vm3, %v405_v34, %v407_v36  ;;  %v415_v43 = vsel %vm412_vm3, %v407_v36, %v409_v37 }
  0xa6   : > { %590 = vmatprep.subr.mxu0 %v414_v38 }
  0xa8   : > { %v411_v39 = vpop.permute.xlu0 %410  ;;  %v403_v40 = vpop.permute.xlu1 %402 }
  0xa9   : > { %v413_v41 = vsel %vm412_vm3, %v403_v40, %v405_v34  ;;  %v416_v42 = vsel %vm412_vm3, %v409_v37, %v411_v39 }
  0xaa   : > { %591 = vmatpush1.msra.mxu0 %v413_v41  ;;  %661 = vmatprep.subr.mxu1 %v416_v42 }
  0xab   : > { %662 = vmatpush1.msra.mxu1 %v415_v43 }
  0xac   : > { %v374_v44 = vpop.permute.xlu1 %373  ;;  %v372_v45 = vpop.permute.xlu0 %371 }
  0xad   : > { %v381_v46 = vsel %vm379_vm4, %v372_v45, %v374_v44 }
  0xae   : > { %592 = vmatprep.subr.mxu0 %v381_v46 }
  0xb0   : > { %v378_v47 = vpop.permute.xlu1 %377  ;;  %v376_v48 = vpop.permute.xlu0 %375 }
  0xb1   : > { %v383_v49 = vsel %vm379_vm4, %v376_v48, %v378_v47  ;;  %v382_v50 = vsel %vm379_vm4, %v374_v44, %v376_v48 }
  0xb2   : > { %663 = vmatprep.subr.mxu1 %v383_v49 }
  0xb3   : > { %664 = vmatpush1.msra.mxu1 %v382_v50 }
  0xb4   : > { %v370_v51 = vpop.permute.xlu0 %369  ;;  %v339_v52 = vpop.permute.xlu1 %338 }
  0xb5   : > { %v380_v53 = vsel %vm379_vm4, %v370_v51, %v372_v45 }
  0xb6   : > { %593 = vmatpush1.msra.mxu0 %v380_v53 }
  0xb8   : > { %v341_v54 = vpop.permute.xlu0 %340  ;;  %v343_v55 = vpop.permute.xlu1 %342 }
  0xb9   : > { %v348_v56 = vsel %vm346_vm5, %v339_v52, %v341_v54  ;;  %v349_v61 = vsel %vm346_vm5, %v341_v54, %v343_v55 }
  0xba   : > { %594 = vmatprep.subr.mxu0 %v348_v56 }
  0xbc   : > { %v345_v57 = vpop.permute.xlu0 %344  ;;  %v337_v58 = vpop.permute.xlu1 %336 }
  0xbd   : > { %v347_v59 = vsel %vm346_vm5, %v337_v58, %v339_v52  ;;  %v350_v60 = vsel %vm346_vm5, %v343_v55, %v345_v57 }
  0xbe   : > { %595 = vmatpush1.msra.mxu0 %v347_v59  ;;  %665 = vmatprep.subr.mxu1 %v350_v60 }
  0xbf   : > { %666 = vmatpush1.msra.mxu1 %v349_v61 }
  0xc0   : > { %v308_v62 = vpop.permute.xlu1 %307  ;;  %v306_v63 = vpop.permute.xlu0 %305 }
  0xc1   : > { %v315_v2 = vsel %vm313_vm6, %v306_v63, %v308_v62 }
  0xc2   : > { %596 = vmatprep.subr.mxu0 %v315_v2 }
  0xc4   : > { %v312_v6 = vpop.permute.xlu1 %311  ;;  %v310_v8 = vpop.permute.xlu0 %309 }
  0xc5   : > { %v317_v9 = vsel %vm313_vm6, %v310_v8, %v312_v6  ;;  %v316_v10 = vsel %vm313_vm6, %v308_v62, %v310_v8 }
  0xc6   : > { %667 = vmatprep.subr.mxu1 %v317_v9 }
  0xc7   : > { %668 = vmatpush1.msra.mxu1 %v316_v10 }
  0xc8   : > { %v304_v11 = vpop.permute.xlu0 %303  ;;  %v273_v12 = vpop.permute.xlu1 %272 }
  0xc9   : > { %v314_v13 = vsel %vm313_vm6, %v304_v11, %v306_v63 }
  0xca   : > { %597 = vmatpush1.msra.mxu0 %v314_v13 }
  0xcc   : > { %v275_v14 = vpop.permute.xlu0 %274  ;;  %v277_v15 = vpop.permute.xlu1 %276 }
  0xcd   : > { %v282_v16 = vsel %vm280_vm7, %v273_v12, %v275_v14  ;;  %v283_v21 = vsel %vm280_vm7, %v275_v14, %v277_v15 }
  0xce   : > { %598 = vmatprep.subr.mxu0 %v282_v16 }
  0xd0   : > { %v279_v17 = vpop.permute.xlu0 %278  ;;  %v271_v18 = vpop.permute.xlu1 %270 }
  0xd1   : > { %v281_v19 = vsel %vm280_vm7, %v271_v18, %v273_v12  ;;  %v284_v20 = vsel %vm280_vm7, %v277_v15, %v279_v17 }
  0xd2   : > { %599 = vmatpush1.msra.mxu0 %v281_v19  ;;  %669 = vmatprep.subr.mxu1 %v284_v20 }
  0xd3   : > { %600 = vmatprep.subr.mxu0 %v3515_v1  ;;  %670 = vmatpush1.msra.mxu1 %v283_v21 }
  0xd4   : > { %601 = vmatpush1.msra.mxu0 %v3526_v4  ;;  %671 = vmatprep.subr.mxu1 %v3513_v0  ;;  %v971_v33 = vpop.permute.xlu1 %970 }
  0xd5   : > { %3332 = vmatmul.mubr.msk.f32.vlgmr.msra.gmra.mxu0 %vm566_vm8, %v524_v22  ;;  %672 = vmatpush1.msra.mxu1 %v3521_v3 }
  0xd6   : > { %3333 = vmatmul.mubr.msk.f32.vlgmr.msra.gmra.mxu1 %vm566_vm8, %v524_v22  ;;  %1093 = vmatprep.mubr.f32.mxu0 %v4655_v5 }
  0xd7   : > { %1164 = vmatprep.mubr.f32.mxu1 %v4655_v5 }
  0xd8   : > { %v907_v35 = vpop.permute.xlu1 %906 }
  0xdc   : > { %v3741_v37 = vpop.permute.xlu1 %842 }
  0xdd   : > { %v564_v23 = vpop.permute.xlu0 %563 }
  0xe0   : > { %v3745_v39 = vpop.permute.xlu1 %778 }
  0xe1   : > { %v939_v34 = vpop.permute.xlu0 %938 }
  0xe5   : > { %v875_v36 = vpop.permute.xlu0 %874 }
  0xe9   : > { %v3743_v38 = vpop.permute.xlu0 %810 }
 0x195   : > { %v636_v24 = vpop.f32.mrf.mxu0 }
 0x196   : > { %v637_v25 = vadd.f32 %v636_v24, %v564_v23  ;;  %v707_v26 = vpop.f32.mrf.mxu1 }
 0x197   : > { %v708_v1 = vadd.f32 %v707_v26, %v564_v23  ;;  %v638_v0 = vpop.f32.mrf.mxu0 }
 0x198   : > { %v3658_v27 = vmax.f32 %v637_v25, 0.0  ;;  %v639_v3 = vadd.f32 %v638_v0, %v564_v23  ;;  %v709_v28 = vpop.f32.mrf.mxu1 }
 0x199   : > { %v3660_v4 = vmax.f32 %v708_v1, 0.0  ;;  %v710_v29 = vadd.f32 %v709_v28, %v564_v23 }
 0x19a   : > { %962 = vrot.lane.b32.xlu0 %v3658_v27, %s3432_s24  ;;  %v3690_v30 = vmax.f32 %v639_v3, 0.0 }
 0x19b   : > { %966 = vrot.lane.b32.xlu1 %v3660_v4, %s3432_s24  ;;  %v3696_v31 = vmax.f32 %v710_v29, 0.0 }
 0x19e   : > { %934 = vrot.lane.b32.xlu0 %v3660_v4, %s3433_s25 }
 0x19f   : > { %930 = vrot.lane.b32.xlu1 %v3658_v27, %s3433_s25 }
 0x1a2   : > { %898 = vrot.lane.b32.xlu0 %v3658_v27, %s3434_s26 }
 0x1a3   : > { %902 = vrot.lane.b32.xlu1 %v3660_v4, %s3434_s26 }
 0x1a6   : > { %870 = vrot.lane.b32.xlu0 %v3660_v4, %s3435_s27 }
 0x1a7   : > { %866 = vrot.lane.b32.xlu1 %v3658_v27, %s3435_s27 }
 0x1aa   : > { %834 = vrot.lane.b32.xlu0 %v3658_v27, %s3436_s28 }
 0x1ab   : > { %838 = vrot.lane.b32.xlu1 %v3660_v4, %s3436_s28 }
 0x1ae   : > { %806 = vrot.lane.b32.xlu0 %v3660_v4, %s3437_s29 }
 0x1af   : > { %802 = vrot.lane.b32.xlu1 %v3658_v27, %s3437_s29 }
 0x1b2   : > { %770 = vrot.lane.b32.xlu0 %v3658_v27, %s3438_s30 }
 0x1b3   : > { %774 = vrot.lane.b32.xlu1 %v3660_v4, %s3438_s30 }
 0x1b6   : > { %742 = vrot.lane.b32.xlu0 %v3660_v4, %s3440_s6 }
 0x1b7   : > { %964 = vrot.lane.b32.xlu1 %v3690_v30, %s3432_s24 }
 0x1ba   : > { %968 = vrot.lane.b32.xlu0 %v3696_v31, %s3432_s24  ;;  %s3451_s24 = smov 59  }
 0x1bb   : > { %932 = vrot.lane.b32.xlu1 %v3690_v30, %s3433_s25 }
 0x1be   : > { %900 = vrot.lane.b32.xlu0 %v3690_v30, %s3434_s26 }
 0x1bf   : > { %936 = vrot.lane.b32.xlu1 %v3696_v31, %s3433_s25  ;;  %s3452_s25 = smov 3  }
 0x1c2   : > { %904 = vrot.lane.b32.xlu0 %v3696_v31, %s3434_s26  ;;  %s3453_s26 = smov 65  }
 0x1c3   : > { %868 = vrot.lane.b32.xlu1 %v3690_v30, %s3435_s27 }
 0x1c6   : > { %836 = vrot.lane.b32.xlu0 %v3690_v30, %s3436_s28 }
 0x1c7   : > { %872 = vrot.lane.b32.xlu1 %v3696_v31, %s3435_s27  ;;  %s3454_s27 = smov 66  }
 0x1ca   : > { %840 = vrot.lane.b32.xlu0 %v3696_v31, %s3436_s28 }
 0x1cb   : > { %804 = vrot.lane.b32.xlu1 %v3690_v30, %s3437_s29 }
 0x1ce   : > { %772 = vrot.lane.b32.xlu0 %v3690_v30, %s3438_s30 }
 0x1cf   : > { %808 = vrot.lane.b32.xlu1 %v3696_v31, %s3437_s29 }
 0x1d2   : > { %776 = vrot.lane.b32.xlu0 %v3696_v31, %s3438_s30  ;;  %s3455_s30 = smov 63  }
 0x1d3   : > { %740 = vrot.lane.b32.xlu1 %v3690_v30, %s3440_s6 }
 0x1d6   : > { %746 = vrot.lane.b32.xlu0 %v4655_v5, %s3440_s6 }
 0x1d7   : > { %744 = vrot.lane.b32.xlu1 %v3696_v31, %s3440_s6 }
 0x1da   : > { %1023 = vperm.xlu0 %3401, %v3598_v7  }
 0x1db   : > { %738 = vrot.lane.b32.xlu1 %v3658_v27, %s3440_s6 }
 0x1de   : > { %1406 = vrot.lane.b32.xlu0 %v4655_v5, %s3437_s29 }
 0x1df   : > { %1438 = vrot.lane.b32.xlu1 %v4655_v5, %s3436_s28 }
 0x1e2   : > { %1341 = vrot.lane.b32.xlu0 %v4655_v5, %s3440_s6 }
 0x1e3   : > { %1373 = vrot.lane.b32.xlu1 %v4655_v5, %s3443_s11 }
 0x1e6   : > { %1292 = vrot.lane.b32.xlu0 %v4655_v5, %s3444_s14 }
 0x1e7   : > { %1259 = vrot.lane.b32.xlu1 %v4655_v5, %s3445_s15 }
 0x1ea   : > { %1226 = vrot.lane.b32.xlu0 %v4655_v5, %s3446_s16 }
 0x20c   : > { %v963_v40 = vpop.permute.xlu0 %962 }
 0x20d   : > { %v967_v41 = vpop.permute.xlu1 %966 }
 0x210   : > { %v935_v42 = vpop.permute.xlu0 %934 }
 0x211   : > { %v931_v43 = vpop.permute.xlu1 %930 }
 0x214   : > { %v899_v44 = vpop.permute.xlu0 %898 }
 0x215   : > { %v903_v45 = vpop.permute.xlu1 %902 }
 0x218   : > { %v871_v46 = vpop.permute.xlu0 %870 }
 0x219   : > { %v867_v47 = vpop.permute.xlu1 %866 }
 0x21c   : > { %v835_v48 = vpop.permute.xlu0 %834 }
 0x21d   : > { %v839_v49 = vpop.permute.xlu1 %838 }
 0x220   : > { %v3747_v50 = vpop.permute.xlu0 %806 }
 0x221   : > { %v803_v51 = vpop.permute.xlu1 %802 }
 0x224   : > { %v771_v52 = vpop.permute.xlu0 %770 }
 0x225   : > { %v3749_v53 = vpop.permute.xlu1 %774 }
 0x228   : > { %v3751_v54 = vpop.permute.xlu0 %742 }
 0x229   : > { %v965_v55 = vpop.permute.xlu1 %964 }
 0x22a   : > { %v973_v56 = vsel %vm511_vm0, %v965_v55, %v967_v41  ;;  %v972_v57 = vsel %vm511_vm0, %v963_v40, %v965_v55 }
 0x22b   : > { %1043 = vmatprep.subr.mxu0 %v973_v56 }
 0x22c   : > { %1044 = vmatpush1.msra.mxu0 %v972_v57  ;;  %v969_v58 = vpop.permute.xlu0 %968 }
 0x22d   : > { %v933_v59 = vpop.permute.xlu1 %932  ;;  %v975_v60 = vsel %vm511_vm0, %v969_v58, %v971_v33  ;;  %v974_v61 = vsel %vm511_vm0, %v967_v41, %v969_v58  ;;  %vm2303_vm0 = vcmask 531456  }
 0x22e   : > { %1114 = vmatprep.subr.mxu1 %v975_v60  ;;  %v941_v62 = vsel %vm478_vm1, %v933_v59, %v935_v42  ;;  %v940_v63 = vsel %vm478_vm1, %v931_v43, %v933_v59 }
 0x22f   : > { %1045 = vmatprep.subr.mxu0 %v941_v62  ;;  %1115 = vmatpush1.msra.mxu1 %v974_v61 }
 0x230   : > { %1046 = vmatpush1.msra.mxu0 %v940_v63  ;;  %v901_v2 = vpop.permute.xlu0 %900 }
 0x231   : > { %v937_v6 = vpop.permute.xlu1 %936  ;;  %v909_v8 = vsel %vm445_vm2, %v901_v2, %v903_v45  ;;  %v908_v9 = vsel %vm445_vm2, %v899_v44, %v901_v2 }
 0x232   : > { %1047 = vmatprep.subr.mxu0 %v909_v8  ;;  %v943_v10 = vsel %vm478_vm1, %v937_v6, %v939_v34  ;;  %v942_v11 = vsel %vm478_vm1, %v935_v42, %v937_v6  ;;  %vm2270_vm1 = vcmask 1022976  }
 0x233   : > { %1048 = vmatpush1.msra.mxu0 %v908_v9  ;;  %1116 = vmatprep.subr.mxu1 %v943_v10 }
 0x234   : > { %1117 = vmatpush1.msra.mxu1 %v942_v11  ;;  %v905_v12 = vpop.permute.xlu0 %904 }
 0x235   : > { %v869_v13 = vpop.permute.xlu1 %868  ;;  %v911_v14 = vsel %vm445_vm2, %v905_v12, %v907_v35  ;;  %v910_v15 = vsel %vm445_vm2, %v903_v45, %v905_v12  ;;  %vm2229_vm2 = vcmask 23552  }
 0x236   : > { %1118 = vmatprep.subr.mxu1 %v911_v14  ;;  %v877_v16 = vsel %vm412_vm3, %v869_v13, %v871_v46  ;;  %v876_v17 = vsel %vm412_vm3, %v867_v47, %v869_v13  ;;  %v3448_v14 = vmov 2  }
 0x237   : > { %1049 = vmatprep.subr.mxu0 %v877_v16  ;;  %1119 = vmatpush1.msra.mxu1 %v910_v15 }
 0x238   : > { %1050 = vmatpush1.msra.mxu0 %v876_v17  ;;  %v837_v18 = vpop.permute.xlu0 %836  ;;  %3402 = vset.pattern.permute.xlu0 %v3448_v14 }
 0x239   : > { %v873_v19 = vpop.permute.xlu1 %872  ;;  %v845_v20 = vsel %vm379_vm4, %v837_v18, %v839_v49  ;;  %v844_v21 = vsel %vm379_vm4, %v835_v48, %v837_v18  ;;  %v226_v48 = vld [vmem:[%s4650_s1] sm:$0xf] }
 0x23a   : > { %1051 = vmatprep.subr.mxu0 %v845_v20  ;;  %v879_v22 = vsel %vm412_vm3, %v873_v19, %v875_v36  ;;  %v878_v23 = vsel %vm412_vm3, %v871_v46, %v873_v19  ;;  %vm2196_vm3 = vcmask 515072  }
 0x23b   : > { %1052 = vmatpush1.msra.mxu0 %v844_v21  ;;  %1120 = vmatprep.subr.mxu1 %v879_v22 }
 0x23c   : > { %1121 = vmatpush1.msra.mxu1 %v878_v23  ;;  %v841_v24 = vpop.permute.xlu0 %840 }
 0x23d   : > { %v805_v25 = vpop.permute.xlu1 %804  ;;  %v847_v26 = vsel %vm379_vm4, %v841_v24, %v3741_v37  ;;  %v846_v1 = vsel %vm379_vm4, %v839_v49, %v841_v24 }
 0x23e   : > { %1122 = vmatprep.subr.mxu1 %v847_v26  ;;  %v813_v0 = vsel %vm346_vm5, %v805_v25, %v3747_v50  ;;  %v812_v3 = vsel %vm346_vm5, %v803_v51, %v805_v25 }
 0x23f   : > { %1053 = vmatprep.subr.mxu0 %v813_v0  ;;  %1123 = vmatpush1.msra.mxu1 %v846_v1 }
 0x240   : > { %1054 = vmatpush1.msra.mxu0 %v812_v3  ;;  %v773_v28 = vpop.permute.xlu0 %772 }
 0x241   : > { %v809_v29 = vpop.permute.xlu1 %808  ;;  %v781_v32 = vsel %vm313_vm6, %v773_v28, %v3749_v53  ;;  %v780_v33 = vsel %vm313_vm6, %v771_v52, %v773_v28 }
 0x242   : > { %1055 = vmatprep.subr.mxu0 %v781_v32  ;;  %v815_v34 = vsel %vm346_vm5, %v809_v29, %v3743_v38  ;;  %v814_v35 = vsel %vm346_vm5, %v3747_v50, %v809_v29 }
 0x243   : > { %1056 = vmatpush1.msra.mxu0 %v780_v33  ;;  %1124 = vmatprep.subr.mxu1 %v815_v34 }
 0x244   : > { %1125 = vmatpush1.msra.mxu1 %v814_v35  ;;  %v777_v36 = vpop.permute.xlu0 %776 }
 0x245   : > { %v741_v37 = vpop.permute.xlu1 %740  ;;  %v783_v40 = vsel %vm313_vm6, %v777_v36, %v3745_v39  ;;  %v782_v41 = vsel %vm313_vm6, %v3749_v53, %v777_v36  ;;  %v3334_v39 = vld [vmem:[%s4651_s2 + $0x8] sm:$0xff]  ;;  %vm2130_vm6 = vcmask 564224  }
 0x246   : > { %1126 = vmatprep.subr.mxu1 %v783_v40  ;;  %v749_v42 = vsel %vm280_vm7, %v741_v37, %v3751_v54 }
 0x247   : > { %1057 = vmatprep.subr.mxu0 %v749_v42  ;;  %1127 = vmatpush1.msra.mxu1 %v782_v41 }
 0x248   : > { %v747_v38 = vpop.permute.xlu0 %746 }
 0x249   : > { %v745_v43 = vpop.permute.xlu1 %744 }
 0x24a   : > { %v751_v44 = vsel %vm280_vm7, %v745_v43, %v747_v38  ;;  %v750_v45 = vsel %vm280_vm7, %v3751_v54, %v745_v43 }
 0x24b   : > { %1128 = vmatprep.subr.mxu1 %v751_v44 }
 0x24c   : > { %1129 = vmatpush1.msra.mxu1 %v750_v45 }
 0x24d   : > { %v739_v46 = vpop.permute.xlu1 %738  ;;  %1130 = vmatprep.subr.mxu1 %v3696_v31 }
 0x24e   : > { %v748_v47 = vsel %vm280_vm7, %v739_v46, %v741_v37  ;;  %1131 = vmatpush1.msra.mxu1 %v3660_v4  ;;  %v228_v4 = vlaneseq }
 0x24f   : > { %1058 = vmatpush1.msra.mxu0 %v748_v47  ;;  %3336 = vmatmul.mubr.msk.f32.vlgmr.msra.gmra.mxu1 %vm566_vm8, %v3334_v39 }
 0x250   : > { %1059 = vmatprep.subr.mxu0 %v3690_v30  ;;  %1632 = vmatprep.mubr.f32.mxu1 %v4655_v5  ;;  %v229_v30 = vshrl.u32 %v228_v4, 7 }
 0x251   : > { %1060 = vmatpush1.msra.mxu0 %v3658_v27  ;;  %v1439_v15 = vpop.permute.xlu1 %1438 }
 0x252   : > { %3335 = vmatmul.mubr.msk.f32.vlgmr.msra.gmra.mxu0 %vm566_vm8, %v3334_v39  ;;  %v238_v31 = vsub.s32 2, %v229_v30  ;;  %v230_v50 = vsub.s32 0, %v229_v30  ;;  %v234_v62 = vsub.s32 1, %v229_v30  ;;  %v242_v2 = vsub.s32 3, %v229_v30 }
 0x253   : > { %1561 = vmatprep.mubr.f32.mxu0 %v4655_v5 }
 0x254   : > { %v3814_v52 = vrot.slane %v226_v48, %v238_v31  ;;  %v3816_v55 = vrot.slane %v226_v48, %v230_v50  ;;  %v3850_v8 = vrot.slane %v226_v48, %v234_v62  ;;  %v3856_v10 = vrot.slane %v226_v48, %v242_v2 }
 0x255   : > { %v1024_v27 = vpop.permute.xlu0 %1023  ;;  %v1374_v17 = vpop.permute.xlu1 %1373 }
 0x259   : > { %v3943_v19 = vpop.permute.xlu1 %1259 }
 0x30f   : > { %v1166_v49 = vpop.f32.mrf.mxu1 }
 0x310   : > { %v1167_v51 = vadd.f32 %v1166_v49, %v1024_v27 }
 0x311   : > { %v1168_v61 = vpop.f32.mrf.mxu1 }
 0x312   : > { %v1173_v53 = vmax.f32 %v1167_v51, 0.0  ;;  %v1095_v54 = vpop.f32.mrf.mxu0  ;;  %v1169_v6 = vadd.f32 %v1168_v61, %v1024_v27 }
 0x313   : > { %v1096_v56 = vadd.f32 %v1095_v54, %v1024_v27 }
 0x314   : > { %v3819_v57 = vmul.f32 %v1173_v53, %v3814_v52  ;;  %v1097_v60 = vpop.f32.mrf.mxu0  ;;  %v1174_v11 = vmax.f32 %v1169_v6, 0.0 }
 0x315   : > { %v1171_v58 = vmax.f32 %v1096_v56, 0.0  ;;  %v1098_v63 = vadd.f32 %v1097_v60, %v1024_v27 }
 0x316   : > { %4674 = vst [vmem:[#allocation6_spill] sm:$0xff] %v3819_v57  ;;  %1434 = vrot.lane.b32.xlu1 %v3819_v57, %s3436_s28  ;;  %v3866_v13 = vmul.f32 %v1174_v11, %v3856_v10 }
 0x317   : > { %v3824_v59 = vmul.f32 %v1171_v58, %v3816_v55  ;;  %v1172_v9 = vmax.f32 %v1098_v63, 0.0 }
 0x318   : > { %4677 = vst [vmem:[#allocation9_spill] sm:$0xff] %v3866_v13 }
 0x319   : > { %4675 = vst [vmem:[#allocation7_spill] sm:$0xff] %v3824_v59  ;;  %1430 = vrot.lane.b32.xlu0 %v3824_v59, %s3436_s28  ;;  %v3859_v12 = vmul.f32 %v1172_v9, %v3850_v8 }
 0x31a   : > { %1398 = vrot.lane.b32.xlu1 %v3824_v59, %s3437_s29 }
 0x31b   : > { %4676 = vst [vmem:[#allocation8_spill] sm:$0xff] %v3859_v12 }
 0x31d   : > { %1402 = vrot.lane.b32.xlu0 %v3819_v57, %s3437_s29 }
 0x31e   : > { %1369 = vrot.lane.b32.xlu1 %v3819_v57, %s3443_s11 }
 0x321   : > { %1365 = vrot.lane.b32.xlu0 %v3824_v59, %s3443_s11 }
 0x322   : > { %1333 = vrot.lane.b32.xlu1 %v3824_v59, %s3440_s6 }
 0x325   : > { %1337 = vrot.lane.b32.xlu0 %v3819_v57, %s3440_s6 }
 0x326   : > { %1261 = vrot.lane.b32.xlu1 %v3824_v59, %s3445_s15 }
 0x329   : > { %1294 = vrot.lane.b32.xlu0 %v3824_v59, %s3444_s14 }
 0x32a   : > { %1265 = vrot.lane.b32.xlu1 %v3819_v57, %s3445_s15 }
 0x32d   : > { %1298 = vrot.lane.b32.xlu0 %v3819_v57, %s3444_s14 }
 0x32e   : > { %1195 = vrot.lane.b32.xlu1 %v3824_v59, %s3447_s21 }
 0x331   : > { %1228 = vrot.lane.b32.xlu0 %v3824_v59, %s3446_s16 }
 0x332   : > { %1199 = vrot.lane.b32.xlu1 %v3819_v57, %s3447_s21 }
 0x335   : > { %1232 = vrot.lane.b32.xlu0 %v3819_v57, %s3446_s16 }
 0x336   : > { %1432 = vrot.lane.b32.xlu1 %v3859_v12, %s3436_s28 }
 0x339   : > { %1436 = vrot.lane.b32.xlu0 %v3866_v13, %s3436_s28 }
 0x33a   : > { %1400 = vrot.lane.b32.xlu1 %v3859_v12, %s3437_s29 }
 0x33d   : > { %1367 = vrot.lane.b32.xlu0 %v3859_v12, %s3443_s11 }
 0x33e   : > { %1404 = vrot.lane.b32.xlu1 %v3866_v13, %s3437_s29 }
 0x341   : > { %1371 = vrot.lane.b32.xlu0 %v3866_v13, %s3443_s11 }
 0x342   : > { %1335 = vrot.lane.b32.xlu1 %v3859_v12, %s3440_s6 }
 0x345   : > { %1263 = vrot.lane.b32.xlu0 %v3859_v12, %s3445_s15 }
 0x346   : > { %1339 = vrot.lane.b32.xlu1 %v3866_v13, %s3440_s6 }
 0x349   : > { %1267 = vrot.lane.b32.xlu0 %v3866_v13, %s3445_s15 }
 0x34a   : > { %1296 = vrot.lane.b32.xlu1 %v3859_v12, %s3444_s14 }
 0x34d   : > { %1197 = vrot.lane.b32.xlu0 %v3859_v12, %s3447_s21 }
 0x34e   : > { %1300 = vrot.lane.b32.xlu1 %v3866_v13, %s3444_s14 }
 0x351   : > { %1201 = vrot.lane.b32.xlu0 %v3866_v13, %s3447_s21 }
 0x352   : > { %1230 = vrot.lane.b32.xlu1 %v3859_v12, %s3446_s16 }
 0x355   : > { %1491 = vperm.xlu0 %3402, %v3598_v7   ;;  %v1407_v7 = vpop.permute.xlu0 %1406 }
 0x356   : > { %1234 = vrot.lane.b32.xlu1 %v3866_v13, %s3446_s16 }
 0x359   : > { %1869 = vrot.lane.b32.xlu0 %v4655_v5, %s3437_s29  ;;  %v3931_v16 = vpop.permute.xlu0 %1341 }
 0x35a   : > { %1193 = vrot.lane.b32.xlu1 %v4655_v5, %s3447_s21 }
 0x35d   : > { %1805 = vrot.lane.b32.xlu0 %v4655_v5, %s3440_s6  ;;  %v3941_v18 = vpop.permute.xlu0 %1292 }
 0x35e   : > { %1901 = vrot.lane.b32.xlu1 %v4655_v5, %s3436_s28 }
 0x361   : > { %1757 = vrot.lane.b32.xlu0 %v4655_v5, %s3444_s14  ;;  %v3947_v20 = vpop.permute.xlu0 %1226 }
 0x362   : > { %1837 = vrot.lane.b32.xlu1 %v4655_v5, %s3443_s11 }
 0x365   : > { %1693 = vrot.lane.b32.xlu0 %v4655_v5, %s3446_s16 }
 0x366   : > { %1725 = vrot.lane.b32.xlu1 %v4655_v5, %s3445_s15 }
 0x369   : > { %2334 = vrot.lane.b32.xlu0 %v4655_v5, %s3449_s22 }
 0x36a   : > { %3404 = vrot.lane.b32.xlu1 %v4655_v5, %s3447_s21 }
 0x36d   : > { %2268 = vrot.lane.b32.xlu0 %v4655_v5, %s3450_s23 }
 0x36e   : > { %2367 = vrot.lane.b32.xlu1 %v4655_v5, %s3451_s24 }
 0x371   : > { %2219 = vrot.lane.b32.xlu0 %v4655_v5, %s3452_s25 }
 0x372   : > { %2301 = vrot.lane.b32.xlu1 %v4655_v5, %s3453_s26 }
 0x375   : > { %2153 = vrot.lane.b32.xlu0 %v4655_v5, %s3454_s27 }
 0x376   : > { %2186 = vrot.lane.b32.xlu1 %v4655_v5, %s3455_s30 }
 0x379   : > { %2799 = vrot.lane.b32.xlu0 %v4655_v5, %s3456_s7 }
 0x37a   : > { %2120 = vrot.lane.b32.xlu1 %v4655_v5, %s3457_s8 }
 0x37d   : > { %2653 = vrot.lane.b32.xlu0 %v4655_v5, %s3436_s28 }
 0x37e   : > { %2832 = vrot.lane.b32.xlu1 %v4655_v5, %s3458_s9 }
 0x382   : > { %2734 = vrot.lane.b32.xlu1 %v4655_v5, %s3459_s10 }
 0x386   : > { %2685 = vrot.lane.b32.xlu1 %v4655_v5, %s3460_s12 }
 0x388   : > { %v1435_v21 = vpop.permute.xlu1 %1434 }
 0x38a   : > { %2620 = vrot.lane.b32.xlu1 %v4655_v5, %s3461_s20 }
 0x38b   : > { %v1431_v22 = vpop.permute.xlu0 %1430 }
 0x38c   : > { %v1399_v23 = vpop.permute.xlu1 %1398 }
 0x38f   : > { %v1403_v24 = vpop.permute.xlu0 %1402 }
 0x390   : > { %v1370_v25 = vpop.permute.xlu1 %1369 }
 0x393   : > { %v1366_v26 = vpop.permute.xlu0 %1365 }
 0x394   : > { %v1334_v1 = vpop.permute.xlu1 %1333 }
 0x397   : > { %v1338_v0 = vpop.permute.xlu0 %1337 }
 0x398   : > { %v3951_v3 = vpop.permute.xlu1 %1261 }
 0x399   : > { %v1270_v14 = vsel %vm1269_vm11, %v3943_v19, %v3951_v3 }
 0x39b   : > { %v1295_v28 = vpop.permute.xlu0 %1294 }
 0x39c   : > { %v3953_v29 = vpop.permute.xlu1 %1265  ;;  %v1303_v6 = vsel %vm1302_vm10, %v3941_v18, %v1295_v28 }
 0x39f   : > { %v3955_v32 = vpop.permute.xlu0 %1298 }
 0x3a0   : > { %v3957_v33 = vpop.permute.xlu1 %1195 }
 0x3a3   : > { %v3959_v34 = vpop.permute.xlu0 %1228 }
 0x3a4   : > { %v3961_v35 = vpop.permute.xlu1 %1199 }
 0x3a7   : > { %v3963_v36 = vpop.permute.xlu0 %1232 }
 0x3a8   : > { %v1433_v37 = vpop.permute.xlu1 %1432 }
 0x3a9   : > { %v1441_v40 = vsel %vm379_vm4, %v1433_v37, %v1435_v21  ;;  %v1440_v41 = vsel %vm379_vm4, %v1431_v22, %v1433_v37  ;;  %v1237_v22 = vsel %vm1236_vm12, %v3947_v20, %v3959_v34  ;;  %v3337_v20 = vld [vmem:[%s4651_s2 + $0x10] sm:$0xff] }
 0x3aa   : > { %1511 = vmatprep.subr.mxu0 %v1441_v40 }
 0x3ab   : > { %1512 = vmatpush1.msra.mxu0 %v1440_v41  ;;  %v1437_v42 = vpop.permute.xlu0 %1436 }
 0x3ac   : > { %v1401_v38 = vpop.permute.xlu1 %1400  ;;  %v1443_v43 = vsel %vm379_vm4, %v1437_v42, %v1439_v15  ;;  %v1442_v44 = vsel %vm379_vm4, %v1435_v21, %v1437_v42 }
 0x3ad   : > { %1582 = vmatprep.subr.mxu1 %v1443_v43  ;;  %v1409_v45 = vsel %vm346_vm5, %v1401_v38, %v1403_v24  ;;  %v1408_v39 = vsel %vm346_vm5, %v1399_v23, %v1401_v38 }
 0x3ae   : > { %1513 = vmatprep.subr.mxu0 %v1409_v45  ;;  %1583 = vmatpush1.msra.mxu1 %v1442_v44 }
 0x3af   : > { %1514 = vmatpush1.msra.mxu0 %v1408_v39  ;;  %v1368_v46 = vpop.permute.xlu0 %1367 }
 0x3b0   : > { %v1405_v47 = vpop.permute.xlu1 %1404  ;;  %v1377_v4 = vsel %vm1375_vm9, %v1368_v46, %v1370_v25  ;;  %v1376_v30 = vsel %vm1375_vm9, %v1366_v26, %v1368_v46 }
 0x3b1   : > { %1515 = vmatprep.subr.mxu0 %v1377_v4  ;;  %v1411_v31 = vsel %vm346_vm5, %v1405_v47, %v1407_v7  ;;  %v1410_v27 = vsel %vm346_vm5, %v1403_v24, %v1405_v47 }
 0x3b2   : > { %1516 = vmatpush1.msra.mxu0 %v1376_v30  ;;  %1584 = vmatprep.subr.mxu1 %v1411_v31 }
 0x3b3   : > { %1585 = vmatpush1.msra.mxu1 %v1410_v27  ;;  %v1372_v48 = vpop.permute.xlu0 %1371 }
 0x3b4   : > { %v1336_v49 = vpop.permute.xlu1 %1335  ;;  %v1379_v50 = vsel %vm1375_vm9, %v1372_v48, %v1374_v17  ;;  %v1378_v51 = vsel %vm1375_vm9, %v1370_v25, %v1372_v48 }
 0x3b5   : > { %1586 = vmatprep.subr.mxu1 %v1379_v50  ;;  %v1344_v53 = vsel %vm280_vm7, %v1336_v49, %v1338_v0  ;;  %v1343_v54 = vsel %vm280_vm7, %v1334_v1, %v1336_v49 }
 0x3b6   : > { %1517 = vmatprep.subr.mxu0 %v1344_v53  ;;  %1587 = vmatpush1.msra.mxu1 %v1378_v51 }
 0x3b7   : > { %1518 = vmatpush1.msra.mxu0 %v1343_v54  ;;  %v1264_v56 = vpop.permute.xlu0 %1263 }
 0x3b8   : > { %v1340_v58 = vpop.permute.xlu1 %1339  ;;  %1519 = vmatprep.subr.mxu0 %v3859_v12  ;;  %v1271_v9 = vsel %vm1269_vm11, %v3951_v3, %v1264_v56  ;;  %v1272_v21 = vsel %vm1269_vm11, %v1264_v56, %v3953_v29 }
 0x3b9   : > { %1520 = vmatpush1.msra.mxu0 %v3824_v59  ;;  %v1346_v60 = vsel %vm280_vm7, %v1340_v58, %v3931_v16  ;;  %v1345_v61 = vsel %vm280_vm7, %v1338_v0, %v1340_v58  ;;  %v3463_v59 = vmov 5  }
 0x3ba   : > { %1588 = vmatprep.subr.mxu1 %v1346_v60  ;;  %3408 = vset.pattern.permute.xlu1 %v3463_v59 }
 0x3bb   : > { %1589 = vmatpush1.msra.mxu1 %v1345_v61  ;;  %v1268_v62 = vpop.permute.xlu0 %1267 }
 0x3bc   : > { %v1297_v63 = vpop.permute.xlu1 %1296  ;;  %1590 = vmatprep.subr.mxu1 %v3866_v13  ;;  %v1273_v17 = vsel %vm1269_vm11, %v3953_v29, %v1268_v62 }
 0x3bd   : > { %1591 = vmatpush1.msra.mxu1 %v3819_v57  ;;  %v1304_v2 = vsel %vm1302_vm10, %v1295_v28, %v1297_v63  ;;  %v1305_v16 = vsel %vm1302_vm10, %v1297_v63, %v3955_v32  ;;  %v3464_v57 = vmov 4  }
 0x3be   : > { %1521 = vmatprep.subr.mxu0 %v1304_v2  ;;  %3409 = vset.pattern.permute.xlu0 %v3464_v57  ;;  %v4365_v57 = vld [vmem:[%s4653_s4] sm:$0xff] }
 0x3bf   : > { %1522 = vmatpush1.msra.mxu0 %v1303_v6  ;;  %v1198_v15 = vpop.permute.xlu0 %1197  ;;  %4692 = vst [vmem:[#allocation24_spill] sm:$0xff] %v4365_v57 }
 0x3c0   : > { %v1301_v11 = vpop.permute.xlu1 %1300  ;;  %1523 = vmatprep.subr.mxu0 %v1271_v9  ;;  %v1205_v23 = vsel %vm1203_vm13, %v3957_v33, %v1198_v15  ;;  %v1206_v28 = vsel %vm1203_vm13, %v1198_v15, %v3961_v35 }
 0x3c1   : > { %1524 = vmatpush1.msra.mxu0 %v1270_v14  ;;  %v1306_v7 = vsel %vm1302_vm10, %v3955_v32, %v1301_v11 }
 0x3c2   : > { %1592 = vmatprep.subr.mxu1 %v1306_v7 }
 0x3c3   : > { %1593 = vmatpush1.msra.mxu1 %v1305_v16  ;;  %v1202_v24 = vpop.permute.xlu0 %1201 }
 0x3c4   : > { %v1231_v18 = vpop.permute.xlu1 %1230  ;;  %1594 = vmatprep.subr.mxu1 %v1273_v17  ;;  %v1207_v0 = vsel %vm1203_vm13, %v3961_v35, %v1202_v24 }
 0x3c5   : > { %1595 = vmatpush1.msra.mxu1 %v1272_v21  ;;  %v1238_v19 = vsel %vm1236_vm12, %v3959_v34, %v1231_v18  ;;  %v1239_v1 = vsel %vm1236_vm12, %v1231_v18, %v3963_v36 }
 0x3c6   : > { %1525 = vmatprep.subr.mxu0 %v1238_v19 }
 0x3c7   : > { %1526 = vmatpush1.msra.mxu0 %v1237_v22 }
 0x3c8   : > { %v1235_v25 = vpop.permute.xlu1 %1234  ;;  %1527 = vmatprep.subr.mxu0 %v1205_v23 }
 0x3c9   : > { %v1240_v26 = vsel %vm1236_vm12, %v3963_v36, %v1235_v25 }
 0x3ca   : > { %1596 = vmatprep.subr.mxu1 %v1240_v26 }
 0x3cb   : > { %1597 = vmatpush1.msra.mxu1 %v1239_v1 }
 0x3cc   : > { %v1194_v3 = vpop.permute.xlu1 %1193  ;;  %1598 = vmatprep.subr.mxu1 %v1207_v0 }
 0x3cd   : > { %v1204_v29 = vsel %vm1203_vm13, %v1194_v3, %v3957_v33  ;;  %1599 = vmatpush1.msra.mxu1 %v1206_v28 }
 0x3ce   : > { %1528 = vmatpush1.msra.mxu0 %v1204_v29  ;;  %3339 = vmatmul.mubr.msk.f32.vlgmr.msra.gmra.mxu1 %vm566_vm8, %v3337_v20 }
 0x3cf   : > { %3338 = vmatmul.mubr.msk.f32.vlgmr.msra.gmra.mxu0 %vm566_vm8, %v3337_v20  ;;  %2095 = vmatprep.mubr.f32.mxu1 %v4655_v5 }
 0x3d0   : > { %2024 = vmatprep.mubr.f32.mxu0 %v4655_v5  ;;  %v4028_v32 = vpop.permute.xlu0 %1491 }
 0x3d4   : > { %v4100_v43 = vpop.permute.xlu0 %1869 }
 0x3d8   : > { %v4112_v45 = vpop.permute.xlu0 %1805 }
 0x3dc   : > { %v4120_v46 = vpop.permute.xlu0 %1757 }
 0x3e0   : > { %v4132_v4 = vpop.permute.xlu0 %1693 }
 0x3e4   : > { %v4140_v31 = vpop.permute.xlu0 %2334 }
 0x3e8   : > { %v4153_v51 = vpop.permute.xlu0 %2268 }
 0x3ec   : > { %v4165_v61 = vpop.permute.xlu0 %2219 }
 0x48e   : > { %v1634_v34 = vpop.f32.mrf.mxu1 }
 0x48f   : > { %v1635_v35 = vadd.f32 %v1634_v34, %v4028_v32  ;;  %v1563_v33 = vpop.f32.mrf.mxu0 }
 0x490   : > { %v1564_v36 = vadd.f32 %v1563_v33, %v4028_v32  ;;  %v1636_v27 = vpop.f32.mrf.mxu1 }
 0x491   : > { %v1641_v37 = vmax.f32 %v1635_v35, 0.0  ;;  %v1637_v48 = vadd.f32 %v1636_v27, %v4028_v32  ;;  %v1565_v49 = vpop.f32.mrf.mxu0 }
 0x492   : > { %v1639_v40 = vmax.f32 %v1564_v36, 0.0  ;;  %v1566_v54 = vadd.f32 %v1565_v49, %v4028_v32 }
 0x493   : > { %v4033_v41 = vmul.f32 %v1641_v37, %v3814_v52  ;;  %v4082_v52 = vpop.permute.xlu1 %1901  ;;  %v1642_v53 = vmax.f32 %v1637_v48, 0.0 }
 0x494   : > { %v4036_v42 = vmul.f32 %v1639_v40, %v3816_v55  ;;  %v1640_v60 = vmax.f32 %v1566_v54, 0.0 }
 0x495   : > { %1897 = vrot.lane.b32.xlu1 %v4033_v41, %s3436_s28  ;;  %v4163_v58 = vmul.f32 %v1642_v53, %v3856_v10  ;;  %v4180_v10 = vpop.permute.xlu0 %2153 }
 0x496   : > { %1893 = vrot.lane.b32.xlu0 %v4036_v42, %s3436_s28  ;;  %v4172_v62 = vmul.f32 %v1640_v60, %v3850_v8 }
 0x497   : > { %v4090_v55 = vpop.permute.xlu1 %1837 }
 0x499   : > { %1861 = vrot.lane.b32.xlu1 %v4036_v42, %s3437_s29  ;;  %v4188_v8 = vpop.permute.xlu0 %2799 }
 0x49a   : > { %1865 = vrot.lane.b32.xlu0 %v4033_v41, %s3437_s29  ;;  %4681 = vst [vmem:[#allocation13_spill] sm:$0xff] %v4188_v8 }
 0x49b   : > { %v4098_v38 = vpop.permute.xlu1 %1725 }
 0x49d   : > { %1833 = vrot.lane.b32.xlu1 %v4033_v41, %s3443_s11  ;;  %v4200_v9 = vpop.permute.xlu0 %2653 }
 0x49e   : > { %1829 = vrot.lane.b32.xlu0 %v4036_v42, %s3443_s11  ;;  %4683 = vst [vmem:[#allocation15_spill] sm:$0xff] %v4200_v9 }
 0x49f   : > { %v4108_v44 = vpop.permute.xlu1 %3404 }
 0x4a1   : > { %1797 = vrot.lane.b32.xlu1 %v4036_v42, %s3440_s6 }
 0x4a2   : > { %1801 = vrot.lane.b32.xlu0 %v4033_v41, %s3440_s6 }
 0x4a3   : > { %v4118_v39 = vpop.permute.xlu1 %2367 }
 0x4a5   : > { %1727 = vrot.lane.b32.xlu1 %v4036_v42, %s3445_s15 }
 0x4a6   : > { %1759 = vrot.lane.b32.xlu0 %v4036_v42, %s3444_s14 }
 0x4a7   : > { %v4128_v47 = vpop.permute.xlu1 %2301 }
 0x4a9   : > { %1731 = vrot.lane.b32.xlu1 %v4033_v41, %s3445_s15 }
 0x4aa   : > { %1763 = vrot.lane.b32.xlu0 %v4033_v41, %s3444_s14 }
 0x4ab   : > { %v4138_v30 = vpop.permute.xlu1 %2186 }
 0x4ad   : > { %1663 = vrot.lane.b32.xlu1 %v4036_v42, %s3447_s21 }
 0x4ae   : > { %1695 = vrot.lane.b32.xlu0 %v4036_v42, %s3446_s16 }
 0x4af   : > { %v4149_v50 = vpop.permute.xlu1 %2120 }
 0x4b1   : > { %1667 = vrot.lane.b32.xlu1 %v4033_v41, %s3447_s21 }
 0x4b2   : > { %1699 = vrot.lane.b32.xlu0 %v4033_v41, %s3446_s16 }
 0x4b3   : > { %v4160_v56 = vpop.permute.xlu1 %2832 }
 0x4b4   : > { %4678 = vst [vmem:[#allocation10_spill] sm:$0xff] %v4160_v56 }
 0x4b5   : > { %2363 = vrot.lane.b32.xlu1 %v4033_v41, %s3451_s24 }
 0x4b6   : > { %2359 = vrot.lane.b32.xlu0 %v4036_v42, %s3451_s24 }
 0x4b7   : > { %v4176_v63 = vpop.permute.xlu1 %2734 }
 0x4b8   : > { %4679 = vst [vmem:[#allocation11_spill] sm:$0xff] %v4176_v63  ;;  %v4693_v63 = vmov 0.0  }
 0x4b9   : > { %2326 = vrot.lane.b32.xlu1 %v4036_v42, %s3449_s22 }
 0x4ba   : > { %2330 = vrot.lane.b32.xlu0 %v4033_v41, %s3449_s22 }
 0x4bb   : > { %v4186_v2 = vpop.permute.xlu1 %2685 }
 0x4bc   : > { %4680 = vst [vmem:[#allocation12_spill] sm:$0xff] %v4186_v2 }
 0x4bd   : > { %2297 = vrot.lane.b32.xlu1 %v4033_v41, %s3453_s26 }
 0x4be   : > { %2293 = vrot.lane.b32.xlu0 %v4036_v42, %s3453_s26 }
 0x4bf   : > { %v4196_v6 = vpop.permute.xlu1 %2620 }
 0x4c0   : > { %4682 = vst [vmem:[#allocation14_spill] sm:$0xff] %v4196_v6 }
 0x4c1   : > { %2260 = vrot.lane.b32.xlu1 %v4036_v42, %s3450_s23 }
 0x4c2   : > { %2264 = vrot.lane.b32.xlu0 %v4033_v41, %s3450_s23 }
 0x4c5   : > { %2188 = vrot.lane.b32.xlu1 %v4036_v42, %s3455_s30 }
 0x4c6   : > { %2221 = vrot.lane.b32.xlu0 %v4036_v42, %s3452_s25 }
 0x4c9   : > { %2192 = vrot.lane.b32.xlu1 %v4033_v41, %s3455_s30 }
 0x4ca   : > { %2225 = vrot.lane.b32.xlu0 %v4033_v41, %s3452_s25 }
 0x4cd   : > { %2122 = vrot.lane.b32.xlu1 %v4036_v42, %s3457_s8 }
 0x4ce   : > { %2155 = vrot.lane.b32.xlu0 %v4036_v42, %s3454_s27 }
 0x4d1   : > { %2126 = vrot.lane.b32.xlu1 %v4033_v41, %s3457_s8 }
 0x4d2   : > { %2159 = vrot.lane.b32.xlu0 %v4033_v41, %s3454_s27 }
 0x4d5   : > { %2828 = vrot.lane.b32.xlu1 %v4033_v41, %s3458_s9 }
 0x4d6   : > { %2824 = vrot.lane.b32.xlu0 %v4036_v42, %s3458_s9 }
 0x4d9   : > { %2791 = vrot.lane.b32.xlu1 %v4036_v42, %s3456_s7 }
 0x4da   : > { %2795 = vrot.lane.b32.xlu0 %v4033_v41, %s3456_s7 }
 0x4dd   : > { %2763 = vrot.lane.b32.xlu1 %v4033_v41, %s3447_s21 }
 0x4de   : > { %2726 = vrot.lane.b32.xlu0 %v4036_v42, %s3459_s10 }
 0x4e1   : > { %2759 = vrot.lane.b32.xlu1 %v4036_v42, %s3447_s21 }
 0x4e2   : > { %2655 = vrot.lane.b32.xlu0 %v4036_v42, %s3436_s28 }
 0x4e5   : > { %2730 = vrot.lane.b32.xlu1 %v4033_v41, %s3459_s10 }
 0x4e6   : > { %2659 = vrot.lane.b32.xlu0 %v4033_v41, %s3436_s28 }
 0x4e9   : > { %2687 = vrot.lane.b32.xlu1 %v4036_v42, %s3460_s12 }
 0x4ea   : > { %2589 = vrot.lane.b32.xlu0 %v4036_v42, %s3462_s13 }
 0x4ed   : > { %2691 = vrot.lane.b32.xlu1 %v4033_v41, %s3460_s12 }
 0x4ee   : > { %2593 = vrot.lane.b32.xlu0 %v4033_v41, %s3462_s13 }
 0x4f1   : > { %2622 = vrot.lane.b32.xlu1 %v4036_v42, %s3461_s20 }
 0x4f2   : > { %1899 = vrot.lane.b32.xlu0 %v4163_v58, %s3436_s28 }
 0x4f5   : > { %2626 = vrot.lane.b32.xlu1 %v4033_v41, %s3461_s20 }
 0x4f6   : > { %1831 = vrot.lane.b32.xlu0 %v4172_v62, %s3443_s11 }
 0x4f9   : > { %1895 = vrot.lane.b32.xlu1 %v4172_v62, %s3436_s28 }
 0x4fa   : > { %1835 = vrot.lane.b32.xlu0 %v4163_v58, %s3443_s11 }
 0x4fd   : > { %1863 = vrot.lane.b32.xlu1 %v4172_v62, %s3437_s29 }
 0x4fe   : > { %1729 = vrot.lane.b32.xlu0 %v4172_v62, %s3445_s15 }
 0x501   : > { %1867 = vrot.lane.b32.xlu1 %v4163_v58, %s3437_s29 }
 0x502   : > { %1733 = vrot.lane.b32.xlu0 %v4163_v58, %s3445_s15 }
 0x505   : > { %1799 = vrot.lane.b32.xlu1 %v4172_v62, %s3440_s6 }
 0x506   : > { %1665 = vrot.lane.b32.xlu0 %v4172_v62, %s3447_s21 }
 0x507   : > { %v4206_v11 = vpop.permute.xlu1 %1897 }
 0x508   : > { %v4208_v14 = vpop.permute.xlu0 %1893 }
 0x509   : > { %1803 = vrot.lane.b32.xlu1 %v4163_v58, %s3440_s6 }
 0x50a   : > { %1669 = vrot.lane.b32.xlu0 %v4163_v58, %s3447_s21 }
 0x50b   : > { %v4214_v7 = vpop.permute.xlu1 %1861 }
 0x50c   : > { %v4216_v15 = vpop.permute.xlu0 %1865 }
 0x50d   : > { %1761 = vrot.lane.b32.xlu1 %v4172_v62, %s3444_s14 }
 0x50e   : > { %2361 = vrot.lane.b32.xlu0 %v4172_v62, %s3451_s24 }
 0x50f   : > { %v4222_v16 = vpop.permute.xlu1 %1833 }
 0x510   : > { %v4224_v17 = vpop.permute.xlu0 %1829 }
 0x511   : > { %1765 = vrot.lane.b32.xlu1 %v4163_v58, %s3444_s14 }
 0x512   : > { %2365 = vrot.lane.b32.xlu0 %v4163_v58, %s3451_s24  ;;  %s3353_s24 = sshll.u32 %s4728_s19, 5 }
 0x513   : > { %v4230_v18 = vpop.permute.xlu1 %1797 }
 0x514   : > { %v4232_v21 = vpop.permute.xlu0 %1801 }
 0x515   : > { %1697 = vrot.lane.b32.xlu1 %v4172_v62, %s3446_s16 }
 0x516   : > { %2295 = vrot.lane.b32.xlu0 %v4172_v62, %s3453_s26 }
 0x517   : > { %v4238_v19 = vpop.permute.xlu1 %1727 }
 0x518   : > { %v4240_v22 = vpop.permute.xlu0 %1759 }
 0x519   : > { %1701 = vrot.lane.b32.xlu1 %v4163_v58, %s3446_s16 }
 0x51a   : > { %2299 = vrot.lane.b32.xlu0 %v4163_v58, %s3453_s26 }
 0x51b   : > { %v4246_v23 = vpop.permute.xlu1 %1731 }
 0x51c   : > { %v4248_v24 = vpop.permute.xlu0 %1763 }
 0x51d   : > { %2328 = vrot.lane.b32.xlu1 %v4172_v62, %s3449_s22 }
 0x51e   : > { %2190 = vrot.lane.b32.xlu0 %v4172_v62, %s3455_s30 }
 0x51f   : > { %v4254_v25 = vpop.permute.xlu1 %1663 }
 0x520   : > { %v4256_v26 = vpop.permute.xlu0 %1695 }
 0x521   : > { %2332 = vrot.lane.b32.xlu1 %v4163_v58, %s3449_s22 }
 0x522   : > { %2194 = vrot.lane.b32.xlu0 %v4163_v58, %s3455_s30 }
 0x523   : > { %v4262_v1 = vpop.permute.xlu1 %1667 }
 0x524   : > { %v4264_v0 = vpop.permute.xlu0 %1699 }
 0x525   : > { %2262 = vrot.lane.b32.xlu1 %v4172_v62, %s3450_s23 }
 0x526   : > { %2124 = vrot.lane.b32.xlu0 %v4172_v62, %s3457_s8 }
 0x527   : > { %v4270_v20 = vpop.permute.xlu1 %2363 }
 0x528   : > { %v4272_v3 = vpop.permute.xlu0 %2359 }
 0x529   : > { %2266 = vrot.lane.b32.xlu1 %v4163_v58, %s3450_s23 }
 0x52a   : > { %2128 = vrot.lane.b32.xlu0 %v4163_v58, %s3457_s8 }
 0x52b   : > { %v4278_v28 = vpop.permute.xlu1 %2326 }
 0x52c   : > { %v4280_v29 = vpop.permute.xlu0 %2330 }
 0x52d   : > { %2223 = vrot.lane.b32.xlu1 %v4172_v62, %s3452_s25 }
 0x52e   : > { %2826 = vrot.lane.b32.xlu0 %v4172_v62, %s3458_s9 }
 0x52f   : > { %v4286_v32 = vpop.permute.xlu1 %2297 }
 0x530   : > { %v4288_v34 = vpop.permute.xlu0 %2293 }
 0x531   : > { %2227 = vrot.lane.b32.xlu1 %v4163_v58, %s3452_s25 }
 0x532   : > { %2830 = vrot.lane.b32.xlu0 %v4163_v58, %s3458_s9 }
 0x533   : > { %v4294_v35 = vpop.permute.xlu1 %2260 }
 0x534   : > { %v4296_v33 = vpop.permute.xlu0 %2264 }
 0x535   : > { %2157 = vrot.lane.b32.xlu1 %v4172_v62, %s3454_s27 }
 0x536   : > { %2761 = vrot.lane.b32.xlu0 %v4172_v62, %s3447_s21 }
 0x537   : > { %v4302_v36 = vpop.permute.xlu1 %2188 }
 0x538   : > { %v4304_v37 = vpop.permute.xlu0 %2221 }
 0x539   : > { %2161 = vrot.lane.b32.xlu1 %v4163_v58, %s3454_s27  ;;  %s224_s27 = scalar_lea.vmem %s4654_s5, %s3353_s24 }
 0x53a   : > { %2765 = vrot.lane.b32.xlu0 %v4163_v58, %s3447_s21 }
 0x53b   : > { %v4310_v40 = vpop.permute.xlu1 %2192 }
 0x53c   : > { %v4312_v27 = vpop.permute.xlu0 %2225 }
 0x53d   : > { %2793 = vrot.lane.b32.xlu1 %v4172_v62, %s3456_s7 }
 0x53e   : > { %2728 = vrot.lane.b32.xlu0 %v4172_v62, %s3459_s10 }
 0x53f   : > { %v4318_v48 = vpop.permute.xlu1 %2122 }
 0x540   : > { %v4320_v49 = vpop.permute.xlu0 %2155 }
 0x541   : > { %2797 = vrot.lane.b32.xlu1 %v4163_v58, %s3456_s7 }
 0x542   : > { %2732 = vrot.lane.b32.xlu0 %v4163_v58, %s3459_s10 }
 0x543   : > { %v4326_v53 = vpop.permute.xlu1 %2126 }
 0x544   : > { %4684 = vst [vmem:[#allocation16_spill] sm:$0xff] %v4326_v53  ;;  %v4328_v54 = vpop.permute.xlu0 %2159 }
 0x545   : > { %2657 = vrot.lane.b32.xlu1 %v4172_v62, %s3436_s28 }
 0x546   : > { %2689 = vrot.lane.b32.xlu0 %v4172_v62, %s3460_s12 }
 0x547   : > { %v4334_v60 = vpop.permute.xlu1 %2828 }
 0x548   : > { %v4336_v5 = vpop.permute.xlu0 %2824 }
 0x549   : > { %4685 = vst [vmem:[#allocation17_spill] sm:$0xff] %v4336_v5  ;;  %2661 = vrot.lane.b32.xlu1 %v4163_v58, %s3436_s28 }
 0x54a   : > { %2693 = vrot.lane.b32.xlu0 %v4163_v58, %s3460_s12 }
 0x54b   : > { %v4342_v12 = vpop.permute.xlu1 %2791 }
 0x54c   : > { %4686 = vst [vmem:[#allocation18_spill] sm:$0xff] %v4342_v12  ;;  %v4344_v13 = vpop.permute.xlu0 %2795 }
 0x54d   : > { %4687 = vst [vmem:[#allocation19_spill] sm:$0xff] %v4344_v13  ;;  %2591 = vrot.lane.b32.xlu1 %v4172_v62, %s3462_s13 }
 0x54e   : > { %2624 = vrot.lane.b32.xlu0 %v4172_v62, %s3461_s20 }
 0x54f   : > { %v4350_v6 = vpop.permute.xlu1 %2763 }
 0x550   : > { %4688 = vst [vmem:[#allocation20_spill] sm:$0xff] %v4350_v6  ;;  %v4352_v9 = vpop.permute.xlu0 %2726  ;;  %v3465_v6 = vmov 3  }
 0x551   : > { %4689 = vst [vmem:[#allocation21_spill] sm:$0xff] %v4352_v9  ;;  %2595 = vrot.lane.b32.xlu1 %v4163_v58, %s3462_s13 }
 0x552   : > { %2628 = vrot.lane.b32.xlu0 %v4163_v58, %s3461_s20 }
 0x553   : > { %v4358_v2 = vpop.permute.xlu1 %2759 }
 0x554   : > { %4690 = vst [vmem:[#allocation22_spill] sm:$0xff] %v4358_v2  ;;  %v4360_v59 = vpop.permute.xlu0 %2655 }
 0x555   : > { %4691 = vst [vmem:[#allocation23_spill] sm:$0xff] %v4360_v59  ;;  %2886 = vperm.xlu1 %3408, %v4365_v57  }
 0x556   : > { %2587 = vrot.lane.b32.xlu0 %v4693_v63, %s3462_s13 }
 0x557   : > { %v4370_v9 = vpop.permute.xlu1 %2730 }
 0x558   : > { %4694 = vst [vmem:[#allocation25_spill] sm:$0xff] %v4370_v9  ;;  %v4372_v8 = vpop.permute.xlu0 %2659 }
 0x559   : > { %4695 = vst [vmem:[#allocation26_spill] sm:$0xff] %v4372_v8  ;;  %3410 = vset.pattern.permute.xlu1 %v3465_v6 }
 0x55a   : > { %1954 = vperm.xlu1 %3410, %v4365_v57   ;;  %2421 = vperm.xlu0 %3409, %v4365_v57  }
 0x55b   : > { %v4376_v59 = vpop.permute.xlu1 %2687 }
 0x55c   : > { %4696 = vst [vmem:[#allocation27_spill] sm:$0xff] %v4376_v59  ;;  %v4378_v2 = vpop.permute.xlu0 %2589 }
 0x55d   : > { %4697 = vst [vmem:[#allocation28_spill] sm:$0xff] %v4378_v2 }
 0x55f   : > { %v4380_v56 = vpop.permute.xlu1 %2691 }
 0x560   : > { %4698 = vst [vmem:[#allocation29_spill] sm:$0xff] %v4380_v56  ;;  %v4382_v13 = vpop.permute.xlu0 %2593 }
 0x561   : > { %4699 = vst [vmem:[#allocation30_spill] sm:$0xff] %v4382_v13 }
 0x563   : > { %v4384_v12 = vpop.permute.xlu1 %2622 }
 0x564   : > { %4700 = vst [vmem:[#allocation31_spill] sm:$0xff] %v4384_v12  ;;  %v1900_v53 = vpop.permute.xlu0 %1899 }
 0x565   : > { %v1905_v8 = vsel %vm379_vm4, %v4206_v11, %v1900_v53  ;;  %v1906_v6 = vsel %vm379_vm4, %v1900_v53, %v4082_v52 }
 0x566   : > { %2045 = vmatprep.subr.mxu1 %v1906_v6 }
 0x567   : > { %v4390_v9 = vpop.permute.xlu1 %2626  ;;  %2046 = vmatpush1.msra.mxu1 %v1905_v8 }
 0x568   : > { %v1832_v57 = vpop.permute.xlu0 %1831 }
 0x569   : > { %v1840_v8 = vsel %vm1375_vm9, %v1832_v57, %v4222_v16 }
 0x56b   : > { %v1896_v59 = vpop.permute.xlu1 %1895 }
 0x56c   : > { %v1903_v2 = vsel %vm379_vm4, %v4208_v14, %v1896_v59  ;;  %v1836_v56 = vpop.permute.xlu0 %1835  ;;  %v1904_v13 = vsel %vm379_vm4, %v1896_v59, %v4206_v11  ;;  %v1839_v14 = vsel %vm1375_vm9, %v4224_v17, %v1832_v57 }
 0x56d   : > { %1974 = vmatprep.subr.mxu0 %v1904_v13 }
 0x56e   : > { %1975 = vmatpush1.msra.mxu0 %v1903_v2 }
 0x56f   : > { %v1864_v12 = vpop.permute.xlu1 %1863 }
 0x570   : > { %v1871_v5 = vsel %vm346_vm5, %v4214_v7, %v1864_v12  ;;  %v1730_v52 = vpop.permute.xlu0 %1729  ;;  %v1872_v53 = vsel %vm346_vm5, %v1864_v12, %v4216_v15  ;;  %v1841_v12 = vsel %vm1375_vm9, %v4222_v16, %v1836_v56 }
 0x571   : > { %1976 = vmatprep.subr.mxu0 %v1872_v53 }
 0x572   : > { %1977 = vmatpush1.msra.mxu0 %v1871_v5  ;;  %v1842_v5 = vsel %vm1375_vm9, %v1836_v56, %v4090_v55  ;;  %vm2801_vm9 = vcmask 146432  }
 0x573   : > { %v1868_v6 = vpop.permute.xlu1 %1867  ;;  %1978 = vmatprep.subr.mxu0 %v1840_v8  ;;  %v1735_v8 = vsel %vm1269_vm11, %v4098_v38, %v4238_v19 }
 0x574   : > { %v1873_v13 = vsel %vm346_vm5, %v4216_v15, %v1868_v6  ;;  %1979 = vmatpush1.msra.mxu0 %v1839_v14  ;;  %v1734_v2 = vpop.permute.xlu0 %1733  ;;  %v1874_v11 = vsel %vm346_vm5, %v1868_v6, %v4100_v43  ;;  %vm2163_vm5 = vcmask 539648  }
 0x575   : > { %2047 = vmatprep.subr.mxu1 %v1874_v11 }
 0x576   : > { %2048 = vmatpush1.msra.mxu1 %v1873_v13 }
 0x577   : > { %v1800_v7 = vpop.permute.xlu1 %1799  ;;  %2049 = vmatprep.subr.mxu1 %v1842_v5 }
 0x578   : > { %v1807_v17 = vsel %vm280_vm7, %v4230_v18, %v1800_v7  ;;  %2050 = vmatpush1.msra.mxu1 %v1841_v12  ;;  %v1666_v15 = vpop.permute.xlu0 %1665  ;;  %v1808_v59 = vsel %vm280_vm7, %v1800_v7, %v4232_v21  ;;  %v3406_v12 = vunpack.i.l.bf16 %v4108_v44  ;;  %v3340_v7 = vld [vmem:[%s4651_s2 + $0x18] sm:$0xff] }
 0x579   : > { %1980 = vmatprep.subr.mxu0 %v1808_v59 }
 0x57a   : > { %1981 = vmatpush1.msra.mxu0 %v1807_v17 }
 0x57b   : > { %v1804_v43 = vpop.permute.xlu1 %1803  ;;  %1982 = vmatprep.subr.mxu0 %v4172_v62 }
 0x57c   : > { %v1809_v55 = vsel %vm280_vm7, %v4232_v21, %v1804_v43  ;;  %1983 = vmatpush1.msra.mxu0 %v4036_v42  ;;  %v1670_v56 = vpop.permute.xlu0 %1669  ;;  %v1810_v16 = vsel %vm280_vm7, %v1804_v43, %v4112_v45  ;;  %v1767_v21 = vsel %vm1302_vm10, %v4120_v46, %v4240_v22  ;;  %v1736_v45 = vsel %vm1269_vm11, %v4238_v19, %v1730_v52 }
 0x57d   : > { %2051 = vmatprep.subr.mxu1 %v1810_v16  ;;  %v1738_v46 = vsel %vm1269_vm11, %v4246_v23, %v1734_v2  ;;  %v1672_v2 = vsel %vm1203_vm13, %v4254_v25, %v1666_v15  ;;  %v1674_v43 = vsel %vm1203_vm13, %v4262_v1, %v1670_v56  ;;  %vm2834_vm7 = vcmask 105472  }
 0x57e   : > { %2052 = vmatpush1.msra.mxu1 %v1809_v55  ;;  %v1673_v55 = vsel %vm1203_vm13, %v1666_v15, %v4262_v1 }
 0x57f   : > { %v1762_v18 = vpop.permute.xlu1 %1761  ;;  %2053 = vmatprep.subr.mxu1 %v4163_v58 }
 0x580   : > { %2054 = vmatpush1.msra.mxu1 %v4033_v41  ;;  %v2362_v57 = vpop.permute.xlu0 %2361  ;;  %v1768_v53 = vsel %vm1302_vm10, %v4240_v22, %v1762_v18  ;;  %v1769_v11 = vsel %vm1302_vm10, %v1762_v18, %v4248_v24  ;;  %v1737_v22 = vsel %vm1269_vm11, %v1730_v52, %v4246_v23  ;;  %v1671_v23 = vsel %vm1203_vm13, %v3406_v12, %v4254_v25 }
 0x581   : > { %1984 = vmatprep.subr.mxu0 %v1768_v53  ;;  %v2370_v25 = vsel %vm2369_vm14, %v4272_v3, %v2362_v57  ;;  %vm2695_vm11 = vcmask 39936  }
 0x582   : > { %1985 = vmatpush1.msra.mxu0 %v1767_v21 }
 0x583   : > { %v1766_v14 = vpop.permute.xlu1 %1765  ;;  %1986 = vmatprep.subr.mxu0 %v1736_v45 }
 0x584   : > { %1987 = vmatpush1.msra.mxu0 %v1735_v8  ;;  %v2366_v6 = vpop.permute.xlu0 %2365  ;;  %v1770_v13 = vsel %vm1302_vm10, %v4248_v24, %v1766_v14  ;;  %v1703_v24 = vsel %vm1236_vm12, %v4132_v4, %v4256_v26  ;;  %vm2736_vm10 = vcmask 1006592  }
 0x585   : > { %2055 = vmatprep.subr.mxu1 %v1770_v13  ;;  %v2372_v1 = vsel %vm2369_vm14, %v4270_v20, %v2366_v6 }
 0x586   : > { %2056 = vmatpush1.msra.mxu1 %v1769_v11 }
 0x587   : > { %v1698_v5 = vpop.permute.xlu1 %1697  ;;  %2057 = vmatprep.subr.mxu1 %v1738_v46  ;;  %v2197_v46 = vsel %vm2196_vm3, %v4138_v30, %v4302_v36 }
 0x588   : > { %2058 = vmatpush1.msra.mxu1 %v1737_v22  ;;  %v2296_v38 = vpop.permute.xlu0 %2295  ;;  %v1704_v19 = vsel %vm1236_vm12, %v4256_v26, %v1698_v5  ;;  %v2371_v26 = vsel %vm2369_vm14, %v2362_v57, %v4270_v20  ;;  %v1705_v59 = vsel %vm1236_vm12, %v1698_v5, %v4264_v0  ;;  %v2373_v57 = vsel %vm2369_vm14, %v2366_v6, %v4118_v39 }
 0x589   : > { %1988 = vmatprep.subr.mxu0 %v1704_v19  ;;  %v2304_v15 = vsel %vm2303_vm0, %v4288_v34, %v2296_v38 }
 0x58a   : > { %1989 = vmatpush1.msra.mxu0 %v1703_v24 }
 0x58b   : > { %v1702_v52 = vpop.permute.xlu1 %1701  ;;  %1990 = vmatprep.subr.mxu0 %v1672_v2 }
 0x58c   : > { %1991 = vmatpush1.msra.mxu0 %v1671_v23  ;;  %v2300_v17 = vpop.permute.xlu0 %2299  ;;  %v1706_v4 = vsel %vm1236_vm12, %v4264_v0, %v1702_v52  ;;  %v3343_v23 = vld [vmem:[%s4651_s2 + $0x20] sm:$0xff]  ;;  %vm2630_vm12 = vcmask 900096  }
 0x58d   : > { %2059 = vmatprep.subr.mxu1 %v1706_v4  ;;  %2441 = vmatprep.subr.mxu0 %v2371_v26  ;;  %v2307_v21 = vsel %vm2303_vm0, %v2300_v17, %v4128_v47  ;;  %v2306_v34 = vsel %vm2303_vm0, %v4286_v32, %v2300_v17  ;;  %v4702_v17 = vld [vmem:[#allocation16_spill] sm:$0xff] }
 0x58e   : > { %3341 = vmatmul.mubr.msk.f32.vlgmr.msra.gmra.mxu0 %vm566_vm8, %v3340_v7  ;;  %2060 = vmatpush1.msra.mxu1 %v1705_v59 }
 0x58f   : > { %2442 = vmatpush1.msra.mxu0 %v2370_v25  ;;  %v2329_v16 = vpop.permute.xlu1 %2328  ;;  %2061 = vmatprep.subr.mxu1 %v1674_v43 }
 0x590   : > { %v2337_v0 = vsel %vm2336_vm15, %v4278_v28, %v2329_v16  ;;  %2062 = vmatpush1.msra.mxu1 %v1673_v55  ;;  %v4470_v18 = vpop.permute.xlu0 %2190  ;;  %v2338_v3 = vsel %vm2336_vm15, %v2329_v16, %v4280_v29  ;;  %2491 = vmatprep.mubr.f32.mxu0 %v4693_v63  ;;  %v2305_v28 = vsel %vm2303_vm0, %v2296_v38, %v4286_v32  ;;  %v4704_v55 = vld [vmem:[#allocation19_spill] sm:$0xff] }
 0x591   : > { %2443 = vmatprep.subr.mxu0 %v2338_v3  ;;  %2512 = vmatprep.subr.mxu1 %v2373_v57  ;;  %v2199_v30 = vsel %vm2196_vm3, %v4470_v18, %v4310_v40  ;;  %v4706_v57 = vld [vmem:[#allocation20_spill] sm:$0xff] }
 0x592   : > { %3342 = vmatmul.mubr.msk.f32.vlgmr.msra.gmra.mxu1 %vm566_vm8, %v3340_v7  ;;  %2444 = vmatpush1.msra.mxu0 %v2337_v0  ;;  %v4705_v0 = vld [vmem:[#allocation10_spill] sm:$0xff] }
 0x593   : > { %2513 = vmatpush1.msra.mxu1 %v2372_v1  ;;  %v2333_v56 = vpop.permute.xlu1 %2332  ;;  %2445 = vmatprep.subr.mxu0 %v2305_v28  ;;  %v4707_v28 = vld [vmem:[#allocation22_spill] sm:$0xff] }
 0x594   : > { %v2339_v39 = vsel %vm2336_vm15, %v4280_v29, %v2333_v56  ;;  %2446 = vmatpush1.msra.mxu0 %v2304_v15  ;;  %v2195_v53 = vpop.permute.xlu0 %2194  ;;  %v2340_v20 = vsel %vm2336_vm15, %v2333_v56, %v4140_v31  ;;  %2562 = vmatprep.mubr.f32.mxu1 %v4693_v63 }
 0x595   : > { %2514 = vmatprep.subr.mxu1 %v2340_v20 }
 0x596   : > { %2515 = vmatpush1.msra.mxu1 %v2339_v39  ;;  %v3407_v39 = vunpack.i.h.bf16 %v4108_v44 }
 0x597   : > { %v2263_v45 = vpop.permute.xlu1 %2262  ;;  %2516 = vmatprep.subr.mxu1 %v2307_v21 }
 0x598   : > { %v2271_v29 = vsel %vm2270_vm1, %v4294_v35, %v2263_v45  ;;  %2517 = vmatpush1.msra.mxu1 %v2306_v34  ;;  %v4495_v8 = vpop.permute.xlu0 %2124  ;;  %v2272_v31 = vsel %vm2270_vm1, %v2263_v45, %v4296_v33  ;;  %v4709_v34 = vld [vmem:[#allocation13_spill] sm:$0xff] }
 0x599   : > { %2447 = vmatprep.subr.mxu0 %v2272_v31  ;;  %v2132_v24 = vsel %vm2130_vm6, %v4318_v48, %v4495_v8  ;;  %v2133_v26 = vsel %vm2130_vm6, %v4495_v8, %v4702_v17 }
 0x59a   : > { %2448 = vmatpush1.msra.mxu0 %v2271_v29  ;;  %v4710_v29 = vld [vmem:[#allocation21_spill] sm:$0xff] }
 0x59b   : > { %v2267_v14 = vpop.permute.xlu1 %2266  ;;  %2449 = vmatprep.subr.mxu0 %v4172_v62 }
 0x59c   : > { %v2273_v47 = vsel %vm2270_vm1, %v4296_v33, %v2267_v14  ;;  %2450 = vmatpush1.msra.mxu0 %v4036_v42  ;;  %v2129_v32 = vpop.permute.xlu0 %2128  ;;  %v2274_v35 = vsel %vm2270_vm1, %v2267_v14, %v4153_v51  ;;  %v2230_v33 = vsel %vm2229_vm2, %v4165_v61, %v4304_v37  ;;  %v2198_v51 = vsel %vm2196_vm3, %v4302_v36, %v4470_v18 }
 0x59d   : > { %2518 = vmatprep.subr.mxu1 %v2274_v35  ;;  %v2134_v4 = vsel %vm2130_vm6, %v4702_v17, %v2129_v32  ;;  %v4711_v32 = vld [vmem:[#allocation11_spill] sm:$0xff] }
 0x59e   : > { %2519 = vmatpush1.msra.mxu1 %v2273_v47 }
 0x59f   : > { %v2224_v6 = vpop.permute.xlu1 %2223  ;;  %2520 = vmatprep.subr.mxu1 %v4163_v58 }
 0x5a0   : > { %2521 = vmatpush1.msra.mxu1 %v4033_v41  ;;  %v2827_v13 = vpop.permute.xlu0 %2826  ;;  %v2231_v11 = vsel %vm2229_vm2, %v4304_v37, %v2224_v6  ;;  %v2232_v61 = vsel %vm2229_vm2, %v2224_v6, %v4312_v27  ;;  %v2200_v37 = vsel %vm2196_vm3, %v4310_v40, %v2195_v53  ;;  %v2131_v40 = vsel %vm2130_vm6, %v4149_v50, %v4318_v48  ;;  %v4701_v50 = vld [vmem:[#allocation17_spill] sm:$0xff] }
 0x5a1   : > { %2451 = vmatprep.subr.mxu0 %v2231_v11  ;;  %v2835_v48 = vsel %vm2834_vm7, %v4701_v50, %v2827_v13 }
 0x5a2   : > { %2452 = vmatpush1.msra.mxu0 %v2230_v33  ;;  %v4713_v33 = vld [vmem:[#allocation12_spill] sm:$0xff] }
 0x5a3   : > { %v2228_v22 = vpop.permute.xlu1 %2227  ;;  %2453 = vmatprep.subr.mxu0 %v2198_v51 }
 0x5a4   : > { %2454 = vmatpush1.msra.mxu0 %v2197_v46  ;;  %v2831_v5 = vpop.permute.xlu0 %2830  ;;  %v2233_v38 = vsel %vm2229_vm2, %v4312_v27, %v2228_v22  ;;  %v2164_v27 = vsel %vm2163_vm5, %v4180_v10, %v4320_v49  ;;  %v4715_v22 = vld [vmem:[#allocation15_spill] sm:$0xff] }
 0x5a5   : > { %2522 = vmatprep.subr.mxu1 %v2233_v38  ;;  %v2838_v18 = vsel %vm2834_vm7, %v2831_v5, %v4705_v0  ;;  %v2837_v3 = vsel %vm2834_vm7, %v4334_v60, %v2831_v5 }
 0x5a6   : > { %2523 = vmatpush1.msra.mxu1 %v2232_v61  ;;  %v4716_v61 = vld [vmem:[#allocation29_spill] sm:$0xff] }
 0x5a7   : > { %v2158_v36 = vpop.permute.xlu1 %2157  ;;  %2524 = vmatprep.subr.mxu1 %v2200_v37 }
 0x5a8   : > { %2525 = vmatpush1.msra.mxu1 %v2199_v30  ;;  %v2762_v19 = vpop.permute.xlu0 %2761  ;;  %v2165_v12 = vsel %vm2163_vm5, %v4320_v49, %v2158_v36  ;;  %v2836_v49 = vsel %vm2834_vm7, %v2827_v13, %v4334_v60  ;;  %v2166_v7 = vsel %vm2163_vm5, %v2158_v36, %v4328_v54  ;;  %v4708_v60 = vld [vmem:[#allocation25_spill] sm:$0xff]  ;;  %v4712_v13 = vld [vmem:[#allocation27_spill] sm:$0xff]  ;;  %v4717_v36 = vld [vmem:[#allocation26_spill] sm:$0xff] }
 0x5a9   : > { %2455 = vmatprep.subr.mxu0 %v2165_v12  ;;  %v2770_v1 = vsel %vm1203_vm13, %v2762_v19, %v4706_v57  ;;  %v2769_v15 = vsel %vm1203_vm13, %v4707_v28, %v2762_v19  ;;  %v2696_v51 = vsel %vm2695_vm11, %v4713_v33, %v4712_v13 }
 0x5aa   : > { %2456 = vmatpush1.msra.mxu0 %v2164_v27  ;;  %v4718_v27 = vld [vmem:[#allocation31_spill] sm:$0xff] }
 0x5ab   : > { %v2162_v2 = vpop.permute.xlu1 %2161  ;;  %2457 = vmatprep.subr.mxu0 %v2132_v24 }
 0x5ac   : > { %2458 = vmatpush1.msra.mxu0 %v2131_v40  ;;  %v2766_v52 = vpop.permute.xlu0 %2765  ;;  %v2167_v10 = vsel %vm2163_vm5, %v4328_v54, %v2162_v2  ;;  %v4703_v54 = vld [vmem:[#allocation18_spill] sm:$0xff] }
 0x5ad   : > { %2526 = vmatprep.subr.mxu1 %v2167_v10  ;;  %2906 = vmatprep.subr.mxu0 %v2836_v49  ;;  %v2772_v44 = vsel %vm1203_vm13, %v2766_v52, %v3407_v39  ;;  %v2771_v31 = vsel %vm1203_vm13, %v4706_v57, %v2766_v52  ;;  %vm2597_vm13 = vcmask 941056   ;;  %v4719_v40 = vld [vmem:[#allocation14_spill] sm:$0xff] }
 0x5ae   : > { %3344 = vmatmul.mubr.msk.f32.vlgmr.msra.gmra.mxu0 %vm566_vm8, %v3343_v23  ;;  %2527 = vmatpush1.msra.mxu1 %v2166_v7  ;;  %v2631_v2 = vsel %vm2630_vm12, %v4719_v40, %v4718_v27 }
 0x5af   : > { %2907 = vmatpush1.msra.mxu0 %v2835_v48  ;;  %v2794_v59 = vpop.permute.xlu1 %2793  ;;  %2528 = vmatprep.subr.mxu1 %v2134_v4  ;;  %v4721_v48 = vld [vmem:[#allocation30_spill] sm:$0xff]  ;;  %v3346_v4 = vld [vmem:[%s4651_s2 + $0x28] sm:$0xff] }
 0x5b0   : > { %v2802_v25 = vsel %vm2801_vm9, %v4703_v54, %v2794_v59  ;;  %2529 = vmatpush1.msra.mxu1 %v2133_v26  ;;  %v2729_v43 = vpop.permute.xlu0 %2728  ;;  %v2803_v16 = vsel %vm2801_vm9, %v2794_v59, %v4704_v55  ;;  %2956 = vmatprep.mubr.f32.mxu0 %v4693_v63 }
 0x5b1   : > { %2908 = vmatprep.subr.mxu0 %v2803_v16  ;;  %2977 = vmatprep.subr.mxu1 %v2838_v18  ;;  %v2738_v21 = vsel %vm2736_vm10, %v2729_v43, %v4708_v60  ;;  %v2737_v8 = vsel %vm2736_vm10, %v4710_v29, %v2729_v43  ;;  %v4722_v43 = vld [vmem:[#allocation24_spill] sm:$0xff] }
 0x5b2   : > { %3345 = vmatmul.mubr.msk.f32.vlgmr.msra.gmra.mxu1 %vm566_vm8, %v3343_v23  ;;  %2909 = vmatpush1.msra.mxu0 %v2802_v25  ;;  %v4720_v23 = vld [vmem:[#allocation28_spill] sm:$0xff]  ;;  %v3467_v25 = vmov 7  }
 0x5b3   : > { %2978 = vmatpush1.msra.mxu1 %v2837_v3  ;;  %v2798_v56 = vpop.permute.xlu1 %2797  ;;  %2910 = vmatprep.subr.mxu0 %v2770_v1 }
 0x5b4   : > { %v2804_v53 = vsel %vm2801_vm9, %v4704_v55, %v2798_v56  ;;  %2911 = vmatpush1.msra.mxu0 %v2769_v15  ;;  %v2733_v20 = vpop.permute.xlu0 %2732  ;;  %v2805_v45 = vsel %vm2801_vm9, %v2798_v56, %v4709_v34  ;;  %3027 = vmatprep.mubr.f32.mxu1 %v4693_v63  ;;  %v3468_v55 = vmov 8  }
 0x5b5   : > { %2912 = vmatprep.subr.mxu0 %v2738_v21  ;;  %2979 = vmatprep.subr.mxu1 %v2805_v45  ;;  %v2740_v35 = vsel %vm2736_vm10, %v2733_v20, %v4711_v32  ;;  %v2739_v6 = vsel %vm2736_vm10, %v4708_v60, %v2733_v20 }
 0x5b6   : > { %2913 = vmatpush1.msra.mxu0 %v2737_v8  ;;  %2980 = vmatpush1.msra.mxu1 %v2804_v53 }
 0x5b7   : > { %v2658_v14 = vpop.permute.xlu1 %2657  ;;  %2914 = vmatprep.subr.mxu0 %v4172_v62  ;;  %2981 = vmatprep.subr.mxu1 %v2772_v44 }
 0x5b8   : > { %2915 = vmatpush1.msra.mxu0 %v4036_v42  ;;  %2982 = vmatpush1.msra.mxu1 %v2771_v31  ;;  %v2690_v47 = vpop.permute.xlu0 %2689  ;;  %v4714_v42 = vld [vmem:[#allocation23_spill] sm:$0xff]  ;;  %v2665_v12 = vsel %vm379_vm4, %v2658_v14, %v4717_v36 }
 0x5b9   : > { %2983 = vmatprep.subr.mxu1 %v2740_v35  ;;  %v2697_v11 = vsel %vm2695_vm11, %v4712_v13, %v2690_v47  ;;  %v2664_v46 = vsel %vm379_vm4, %v4714_v42, %v2658_v14  ;;  %v2663_v5 = vsel %vm379_vm4, %v4715_v22, %v4714_v42  ;;  %v2698_v30 = vsel %vm2695_vm11, %v2690_v47, %v4716_v61 }
 0x5ba   : > { %2916 = vmatprep.subr.mxu0 %v2697_v11  ;;  %2984 = vmatpush1.msra.mxu1 %v2739_v6 }
 0x5bb   : > { %v2662_v62 = vpop.permute.xlu1 %2661  ;;  %2917 = vmatpush1.msra.mxu0 %v2696_v51  ;;  %2985 = vmatprep.subr.mxu1 %v4163_v58 }
 0x5bc   : > { %2918 = vmatprep.subr.mxu0 %v2664_v46  ;;  %2986 = vmatpush1.msra.mxu1 %v4033_v41  ;;  %v2694_v38 = vpop.permute.xlu0 %2693  ;;  %v2666_v19 = vsel %vm379_vm4, %v4717_v36, %v2662_v62  ;;  %vm3059_vm4 = vcmask 195584  }
 0x5bd   : > { %2919 = vmatpush1.msra.mxu0 %v2663_v5  ;;  %v2699_v37 = vsel %vm2695_vm11, %v4716_v61, %v2694_v38  ;;  %3412 = vset.pattern.permute.xlu0 %v3467_v25 }
 0x5be   : > { %2987 = vmatprep.subr.mxu1 %v2699_v37  ;;  %3214 = vperm.xlu0 %3412, %v4722_v43  }
 0x5bf   : > { %v2592_v58 = vpop.permute.xlu1 %2591  ;;  %2988 = vmatpush1.msra.mxu1 %v2698_v30  ;;  %v3042_v30 = vld [vmem:[%s4652_s3] sm:$0xff] }
 0x5c0   : > { %2989 = vmatprep.subr.mxu1 %v2666_v19  ;;  %v2625_v41 = vpop.permute.xlu0 %2624  ;;  %v2599_v52 = vsel %vm2597_vm13, %v4720_v23, %v2592_v58  ;;  %v2600_v26 = vsel %vm2597_vm13, %v2592_v58, %v4721_v48 }
 0x5c1   : > { %2990 = vmatpush1.msra.mxu1 %v2665_v12  ;;  %v2632_v24 = vsel %vm2630_vm12, %v4718_v27, %v2625_v41  ;;  %v2633_v50 = vsel %vm2630_vm12, %v2625_v41, %v4390_v9 }
 0x5c2   : > { %2920 = vmatprep.subr.mxu0 %v2632_v24  ;;  %3414 = vset.pattern.permute.xlu0 %v3468_v55 }
 0x5c3   : > { %2921 = vmatpush1.msra.mxu0 %v2631_v2  ;;  %v2596_v10 = vpop.permute.xlu1 %2595 }
 0x5c4   : > { %2922 = vmatprep.subr.mxu0 %v2599_v52  ;;  %v2629_v49 = vpop.permute.xlu0 %2628  ;;  %v2601_v17 = vsel %vm2597_vm13, %v4721_v48, %v2596_v10 }
 0x5c5   : > { %v2634_v7 = vsel %vm2630_vm12, %v4390_v9, %v2629_v49  ;;  %v3466_v9 = vmov 6  }
 0x5c6   : > { %2991 = vmatprep.subr.mxu1 %v2634_v7  ;;  %3411 = vset.pattern.permute.xlu1 %v3466_v9  ;;  %v4723_v7 = vld [vmem:[#allocation6_spill] sm:$0xff] }
 0x5c7   : > { %2992 = vmatpush1.msra.mxu1 %v2633_v50  ;;  %3056 = vperm.xlu1 %3411, %v4722_v43  }
 0x5c8   : > { %2993 = vmatprep.subr.mxu1 %v2601_v17  ;;  %v2588_v59 = vpop.permute.xlu0 %2587  ;;  %v4724_v17 = vld [vmem:[#allocation7_spill] sm:$0xff] }
 0x5c9   : > { %v2598_v54 = vsel %vm2597_vm13, %v2588_v59, %v4720_v23  ;;  %2994 = vmatpush1.msra.mxu1 %v2600_v26 }
 0x5ca   : > { %2923 = vmatpush1.msra.mxu0 %v2598_v54  ;;  %3348 = vmatmul.mubr.msk.f32.vlgmr.msra.gmra.mxu1 %vm566_vm8, %v3346_v4  ;;  %v4725_v54 = vld [vmem:[#allocation9_spill] sm:$0xff] }
 0x5cb   : > { %3347 = vmatmul.mubr.msk.f32.vlgmr.msra.gmra.mxu0 %vm566_vm8, %v3346_v4  ;;  %3198 = vmatprep.mubr.f32.mxu1 %v4693_v63 }
 0x5cc   : > { %3127 = vmatprep.mubr.f32.mxu0 %v4693_v63  ;;  %3413 = vset.pattern.permute.xlu1 %v3468_v55 }
 0x5cd   : > { %3222 = vperm.xlu1 %3413, %v4722_v43   ;;  %v4726_v43 = vld [vmem:[#allocation8_spill] sm:$0xff] }
 0x5d0   : > { %v2887_v63 = vpop.permute.xlu1 %2886 }
 0x5d5   : > { %v2422_v56 = vpop.permute.xlu0 %2421  ;;  %v1955_v20 = vpop.permute.xlu1 %1954 }
 0x639   : > { %v3215_v49 = vpop.permute.xlu0 %3214 }
 0x642   : > { %v3057_v36 = vpop.permute.xlu1 %3056 }
 0x648   : > { %v3223_v59 = vpop.permute.xlu1 %3222 }
 0x64e   : > { %v2026_v0 = vpop.f32.mrf.mxu0 }
 0x64f   : > { %v2027_v51 = vadd.f32 %v2026_v0, %v1955_v20 }
 0x650   : > { %v2028_v3 = vpop.f32.mrf.mxu0 }
 0x651   : > { %v2029_v13 = vadd.f32 %v2028_v3, %v1955_v20  ;;  %v2102_v58 = vmax.f32 %v2027_v51, 0.0 }
 0x652   : > { %v2097_v16 = vpop.f32.mrf.mxu1 }
 0x653   : > { %v2098_v6 = vadd.f32 %v2097_v16, %v1955_v20  ;;  %v2103_v37 = vmax.f32 %v2029_v13, 0.0 }
 0x654   : > { %v2099_v18 = vpop.f32.mrf.mxu1 }
 0x655   : > { %v2100_v47 = vadd.f32 %v2099_v18, %v1955_v20  ;;  %v2104_v61 = vmax.f32 %v2098_v6, 0.0 }
 0x657   : > { %v2105_v5 = vmax.f32 %v2100_v47, 0.0 }
 0x66e   : > { %v2493_v1 = vpop.f32.mrf.mxu0 }
 0x66f   : > { %v2494_v32 = vadd.f32 %v2493_v1, %v2422_v56 }
 0x670   : > { %v2495_v15 = vpop.f32.mrf.mxu0 }
 0x671   : > { %v2496_v14 = vadd.f32 %v2495_v15, %v2422_v56  ;;  %v2569_v38 = vmax.f32 %v2494_v32, 0.0 }
 0x672   : > { %v2564_v57 = vpop.f32.mrf.mxu1 }
 0x673   : > { %v2565_v44 = vadd.f32 %v2564_v57, %v2422_v56  ;;  %v2570_v22 = vmax.f32 %v2496_v14, 0.0 }
 0x674   : > { %v2566_v28 = vpop.f32.mrf.mxu1 }
 0x675   : > { %v2567_v8 = vadd.f32 %v2566_v28, %v2422_v56  ;;  %v2571_v46 = vmax.f32 %v2565_v44, 0.0 }
 0x677   : > { %v2572_v42 = vmax.f32 %v2567_v8, 0.0 }
 0x68a   : > { %v3029_v39 = vpop.f32.mrf.mxu1 }
 0x68b   : > { %v2958_v53 = vpop.f32.mrf.mxu0  ;;  %v3030_v60 = vadd.f32 %v3029_v39, %v2887_v63 }
 0x68c   : > { %v3031_v21 = vpop.f32.mrf.mxu1  ;;  %v2959_v34 = vadd.f32 %v2958_v53, %v2887_v63 }
 0x68d   : > { %v3032_v45 = vadd.f32 %v3031_v21, %v2887_v63  ;;  %v2960_v29 = vpop.f32.mrf.mxu0  ;;  %v3036_v11 = vmax.f32 %v3030_v60, 0.0 }
 0x68e   : > { %v2961_v31 = vadd.f32 %v2960_v29, %v2887_v63  ;;  %v3034_v62 = vmax.f32 %v2959_v34, 0.0 }
 0x68f   : > { %v3037_v35 = vmax.f32 %v3032_v45, 0.0 }
 0x690   : > { %v3035_v33 = vmax.f32 %v2961_v31, 0.0 }
 0x691   : > { %3160 = vmatprep.subr.mxu1 %v3037_v35 }
 0x692   : > { %3089 = vmatprep.subr.mxu0 %v3035_v33  ;;  %3161 = vmatpush1.msra.mxu1 %v3036_v11 }
 0x693   : > { %3090 = vmatpush1.msra.mxu0 %v3034_v62  ;;  %3162 = vmatprep.subr.mxu1 %v2572_v42 }
 0x694   : > { %3091 = vmatprep.subr.mxu0 %v2570_v22  ;;  %3163 = vmatpush1.msra.mxu1 %v2571_v46 }
 0x695   : > { %3092 = vmatpush1.msra.mxu0 %v2569_v38  ;;  %3164 = vmatprep.subr.mxu1 %v2105_v5 }
 0x696   : > { %3093 = vmatprep.subr.mxu0 %v2103_v37  ;;  %3165 = vmatpush1.msra.mxu1 %v2104_v61 }
 0x697   : > { %3094 = vmatpush1.msra.mxu0 %v2102_v58  ;;  %3350 = vmatmul.mubr.msk.f32.vlgmr.msra.gmra.mxu1 %vm3059_vm4, %v3042_v30 }
 0x698   : > { %3349 = vmatmul.mubr.msk.f32.vlgmr.msra.gmra.mxu0 %vm3059_vm4, %v3042_v30 }
 0x757   : > { %v3200_v19 = vpop.f32.mrf.mxu1 }
 0x758   : > { %v3201_v12 = vadd.f32 %v3200_v19, %v3057_v36  ;;  %v3129_v41 = vpop.f32.mrf.mxu0 }
 0x759   : > { %v3130_v27 = vadd.f32 %v3129_v41, %v3057_v36  ;;  %v3202_v24 = vpop.f32.mrf.mxu1 }
 0x75a   : > { %v3207_v40 = vmax.f32 %v3201_v12, 0.0  ;;  %v3203_v2 = vadd.f32 %v3202_v24, %v3057_v36  ;;  %v3131_v23 = vpop.f32.mrf.mxu0 }
 0x75b   : > { %v3205_v52 = vmax.f32 %v3130_v27, 0.0  ;;  %v3132_v10 = vadd.f32 %v3131_v23, %v3057_v36 }
 0x75c   : > { %v3211_v50 = vadd.f32 %v3207_v40, %v4723_v7  ;;  %v3208_v48 = vmax.f32 %v3203_v2, 0.0 }
 0x75d   : > { %v3209_v4 = vadd.f32 %v3205_v52, %v4724_v17  ;;  %v3206_v26 = vmax.f32 %v3132_v10, 0.0 }
 0x75e   : > { %v3212_v9 = vadd.f32 %v3208_v48, %v4725_v54  ;;  %v3219_v25 = vmul.f32 %v3215_v49, %v3211_v50 }
 0x75f   : > { %v3210_v55 = vadd.f32 %v3206_v26, %v4726_v43  ;;  %v3217_v16 = vmul.f32 %v3215_v49, %v3209_v4 }
 0x760   : > { %v3220_v0 = vmul.f32 %v3215_v49, %v3212_v9  ;;  %v3227_v18 = vadd.f32 %v3223_v59, %v3219_v25 }
 0x761   : > { %v3218_v3 = vmul.f32 %v3215_v49, %v3210_v55  ;;  %v3225_v57 = vadd.f32 %v3223_v59, %v3217_v16 }
 0x762   : > { %v3228_v1 = vadd.f32 %v3223_v59, %v3220_v0  ;;  %v3235_v63 = vmul.f32 %v3227_v18, %v3227_v18  ;;  %v3231_v51 = vmul.f32 0.5, %v3227_v18 }
 0x763   : > { %v3226_v28 = vadd.f32 %v3223_v59, %v3218_v3  ;;  %v3233_v15 = vmul.f32 %v3225_v57, %v3225_v57  ;;  %v3229_v46 = vmul.f32 0.5, %v3225_v57 }
 0x764   : > { %v3236_v56 = vmul.f32 %v3228_v1, %v3228_v1  ;;  %v3239_v39 = vmul.f32 %v3235_v63, %v3227_v18  ;;  %v3232_v38 = vmul.f32 0.5, %v3228_v1 }
 0x765   : > { %v3234_v53 = vmul.f32 %v3226_v28, %v3226_v28  ;;  %v3237_v20 = vmul.f32 %v3233_v15, %v3225_v57  ;;  %v3230_v30 = vmul.f32 0.5, %v3226_v28 }
 0x766   : > { %v3240_v60 = vmul.f32 %v3236_v56, %v3228_v1  ;;  %v3243_v21 = vmul.f32 0.044715, %v3239_v39 }
 0x767   : > { %v3238_v34 = vmul.f32 %v3234_v53, %v3226_v28  ;;  %v3241_v45 = vmul.f32 0.044715, %v3237_v20 }
 0x768   : > { %v3244_v29 = vmul.f32 0.044715, %v3240_v60  ;;  %v3247_v8 = vadd.f32 %v3243_v21, %v3227_v18 }
 0x769   : > { %v3242_v44 = vmul.f32 0.044715, %v3238_v34  ;;  %v3245_v31 = vadd.f32 %v3241_v45, %v3225_v57 }
 0x76a   : > { %v3248_v14 = vadd.f32 %v3244_v29, %v3228_v1  ;;  %v3251_v47 = vmul.f32 0.7978846, %v3247_v8 }
 0x76b   : > { %v3246_v32 = vadd.f32 %v3242_v44, %v3226_v28  ;;  %v3249_v35 = vmul.f32 0.7978846, %v3245_v31 }
 0x76c   : > { %v3252_v6 = vmul.f32 0.7978846, %v3248_v14  ;;  %3415 = vtanh.f32 %v3251_v47 }
 0x76d   : > { %v3250_v13 = vmul.f32 0.7978846, %v3246_v32  ;;  %3417 = vtanh.f32 %v3249_v35 }
 0x76e   : > { %3419 = vtanh.f32 %v3252_v6 }
 0x76f   : > { %3421 = vtanh.f32 %v3250_v13 }
 0x779   : > { %v3416_v11 = vpop.eup %3415 }
 0x77a   : > { %v3418_v33 = vpop.eup %3417  ;;  %v3259_v62 = vadd.f32 1.0, %v3416_v11 }
 0x77b   : > { %v3420_v42 = vpop.eup %3419  ;;  %v3257_v22 = vadd.f32 1.0, %v3418_v33 }
 0x77c   : > { %v3422_v5 = vpop.eup %3421  ;;  %v3260_v61 = vadd.f32 1.0, %v3420_v42  ;;  %v3263_v37 = vmul.f32 %v3259_v62, %v3231_v51 }
 0x77d   : > { %v3258_v58 = vadd.f32 1.0, %v3422_v5  ;;  %v3261_v36 = vmul.f32 %v3257_v22, %v3229_v46 }
 0x77e   : > { %v3264_v19 = vmul.f32 %v3260_v61, %v3232_v38  ;;  %3267 = vst [vmem:[%s224_s27 + $0x10] sm:$0xff] %v3263_v37 }
 0x77f   : > { %v3262_v12 = vmul.f32 %v3258_v58, %v3230_v30  ;;  %3265 = vst [vmem:[%s224_s27] sm:$0xff] %v3261_v36 }
 0x780   : > { %3268 = vst [vmem:[%s224_s27 + $0x18] sm:$0xff] %v3264_v19 }
 0x781   : > { %3266 = vst [vmem:[%s224_s27 + $0x8] sm:$0xff] %v3262_v12 }
 0x782 PF: > { %s15_s18 = sadd.s32 1, %s3430_s18  }
 0x783   : > { %p12_p4 = scmp.ge.s32.totalorder %s15_s18, 4  }
 0x785   :  { %14 = sbr.rel (!%p12_p4) target bundleno = 1 (0x1), region = 75 }

</bundles_post_ra>
